<compile_context>
chip_gen: v6e
topology: v6e:2x2x1
jax: 0.10.0
libtpu: 0.0.40
codegen_flags: <defaults>
</compile_context>

<pallas_src>
import functools
import math

import jax
import jax.numpy as jnp
from jax.experimental import pallas as pl
from jax.experimental.pallas import tpu as pltpu

_HIDDEN = 256
_HEAD_LANES = 128   # fused mu/log_sigma head width
_OUT_LANES = 128    # lane-dense output slab width


def _softplus(z):
    # numerically stable softplus using only elementwise VPU/EUP ops
    return jnp.maximum(z, 0.0) + jnp.log1p(jnp.exp(-jnp.abs(z)))


def _round_up(n, m):
    return (n + m - 1) // m * m


def pi_fc_kernel(xe_ref, w1_ref, w2_ref, wh_ref, b_ref, out_ref, *, obs, A):
    tm = xe_ref.shape[0]
    H = w1_ref.shape[-1]

    # packed biases: [ b1 (H) | b2 (H) | b_head (128: mu @ [0,A), ls @ [A,2A)) ]
    b1 = b_ref[:, 0:H]                              # (1, 256) f32
    b2 = b_ref[:, H:2 * H]                          # (1, 256) f32
    bh = b_ref[:, 2 * H:2 * H + _HEAD_LANES]        # (1, 128) f32

    # packed input slab: x at lanes [0, obs), eps at [obs, obs+A), zeros after.
    xe = xe_ref[...]                                # (TM, 128) f32
    eps = xe[:, obs:obs + A]                        # (TM, A)  f32

    # fc1 + relu.  w1 rows for the eps/padding lanes are zero, so feeding the
    # whole slab through the matmul is exactly x @ w1.
    y1 = jnp.dot(xe.astype(jnp.bfloat16), w1_ref[...],
                 preferred_element_type=jnp.float32) + b1
    y1 = jnp.maximum(y1, 0.0)                       # (TM, 256) f32

    # fc2 + relu
    y2 = jnp.dot(y1.astype(jnp.bfloat16), w2_ref[...],
                 preferred_element_type=jnp.float32) + b2
    y2 = jnp.maximum(y2, 0.0)                       # (TM, 256) f32

    # fused 128-lane head: mu at lanes [0, A), log_sigma at [A, 2A)
    head = jnp.dot(y2.astype(jnp.bfloat16), wh_ref[...],
                   preferred_element_type=jnp.float32) + bh   # (TM, 128) f32
    mu = head[:, :A]
    log_sigma = jnp.clip(head[:, A:2 * A], -20.0, 2.0)
    sigma = jnp.exp(log_sigma)

    # reparameterized sample
    x_t = mu + sigma * eps

    # Normal(mu, sigma).log_prob(x_t) = -0.5*eps^2 - log_sigma - 0.5*log(2*pi)
    logp = -0.5 * eps * eps - log_sigma - 0.5 * math.log(2.0 * math.pi)
    # tanh-squash correction: 2*(log(2) - x_t - softplus(-2*x_t))
    corr = 2.0 * (math.log(2.0) - x_t - _softplus(-2.0 * x_t))
    logp_sum = jnp.sum(logp - corr, axis=1, keepdims=True)    # (TM, 1)

    # ONE dense 128-lane store: action in lanes [0, A), log_prob at lane A,
    # zeros elsewhere.  Built fully in registers before the single vst.
    act128 = jnp.concatenate(
        [jnp.tanh(x_t), jnp.zeros((tm, _OUT_LANES - A), jnp.float32)], axis=1)
    lane = jax.lax.broadcasted_iota(jnp.int32, (tm, _OUT_LANES), 1)
    out_ref[...] = jnp.where(lane == A, logp_sum, act128)


def _pallas_forward(xe, w1, w2, wh, b_all, *, kern, TM, W, Bp,
                    single_buffer_weights):
    H = _HIDDEN

    def wspec(shape):
        # constant-index blocks are fetched once; single-buffer them when the
        # installed JAX supports pipeline_mode=pl.Buffered.
        if single_buffer_weights:
            return pl.BlockSpec(shape, lambda i: (0, 0),
                                pipeline_mode=pl.Buffered(1))
        return pl.BlockSpec(shape, lambda i: (0, 0))

    cost = pl.CostEstimate(
        flops=int(2 * Bp * (W * H + H * H + H * _HEAD_LANES)),
        transcendentals=int(5 * Bp * _HEAD_LANES),
        bytes_accessed=int(xe.size * 4 + Bp * _OUT_LANES * 4
                           + (w1.size + w2.size + wh.size) * 2
                           + b_all.size * 4),
    )

    return pl.pallas_call(
        kern,
        out_shape=jax.ShapeDtypeStruct((Bp, _OUT_LANES), jnp.float32),
        grid=(Bp // TM,),
        in_specs=[
            pl.BlockSpec((TM, W), lambda i: (i, 0)),     # packed x|eps: batch-tiled
            wspec((W, H)),                               # fc1 weight (VMEM-resident)
            wspec((H, H)),                               # fc2 weight
            wspec((H, _HEAD_LANES)),                     # fused head weight
            wspec((1, 2 * H + _HEAD_LANES)),             # packed biases
        ],
        out_specs=pl.BlockSpec((TM, _OUT_LANES), lambda i: (i, 0)),
        compiler_params=pltpu.CompilerParams(
            dimension_semantics=("parallel",)),
        cost_estimate=cost,
    )(xe, w1, w2, wh, b_all)


def pi_fc_forward(x, params, eps, *, block_rows=256):
    """Stochastic Pi_FC forward (deterministic=False, with_logprob=True)."""
    x = jnp.asarray(x, jnp.float32)
    eps = jnp.asarray(eps, jnp.float32)
    B, obs = x.shape
    A = eps.shape[-1]
    W = _round_up(obs + A, 128)   # packed input lane width
    assert A + 1 <= _OUT_LANES and 2 * A <= _HEAD_LANES

    # Pack x and eps into one lane-padded slab: x @ [0, obs), eps @ [obs, obs+A).
    xe = jnp.concatenate([x, eps], axis=1)
    xe = jnp.concatenate(
        [xe, jnp.zeros((B, W - obs - A), jnp.float32)], axis=1)

    # Batch tiling: aim for >= 2 grid steps so the "parallel" axis can shard
    # across v7x's two TensorCores; TM stays a multiple of 8 (sublane tile).
    TM = max(8, min(block_rows, _round_up(pl.cdiv(B, 2), 8)))
    Bp = _round_up(B, TM)
    if Bp != B:
        xe = jnp.pad(xe, ((0, Bp - B), (0, 0)))

    w1, w2, wh, b_all = params["w1"], params["w2"], params["w_head"], params["b_all"]
    kern = functools.partial(pi_fc_kernel, obs=obs, A=A)

    try:
        out = _pallas_forward(xe, w1, w2, wh, b_all, kern=kern, TM=TM, W=W,
                              Bp=Bp, single_buffer_weights=True)
    except Exception:
        # Fallback: default double-buffered constant blocks (always supported).
        out = _pallas_forward(xe, w1, w2, wh, b_all, kern=kern, TM=TM, W=W,
                              Bp=Bp, single_buffer_weights=False)

    action = out[:B, :A]
    log_prob = out[:B, A]
    return action, log_prob


def init_params(key, obs_size, action_size, hidden=_HIDDEN):
    """Deterministic init mimicking PyTorch Linear default (U[-1/sqrt(fan_in), +]),
    repacked for the kernel: bf16 weights, zero-padded fc1 rows for the eps/pad
    lanes, fused 128-lane head, packed biases."""
    assert 2 * action_size <= _HEAD_LANES and action_size + 1 <= _OUT_LANES

    def linear(k, fan_in, fan_out):
        kw, kb = jax.random.split(k)
        bound = 1.0 / math.sqrt(fan_in)
        w = jax.random.uniform(kw, (fan_in, fan_out), jnp.float32, -bound, bound)
        b = jax.random.uniform(kb, (1, fan_out), jnp.float32, -bound, bound)
        return w, b

    k1, k2, k3, k4 = jax.random.split(key, 4)
    w1, b1 = linear(k1, obs_size, hidden)
    w2, b2 = linear(k2, hidden, hidden)
    w_mu, b_mu = linear(k3, hidden, action_size)
    w_ls, b_ls = linear(k4, hidden, action_size)

    # fc1 weight zero-padded so the packed-input eps/padding lanes contribute 0.
    W_in = _round_up(obs_size + action_size, 128)
    w1p = jnp.zeros((W_in, hidden), jnp.float32).at[:obs_size].set(w1)

    # fused 128-lane head: mu columns at [0, A), log_sigma columns at [A, 2A)
    w_head = jnp.zeros((hidden, _HEAD_LANES), jnp.float32)
    w_head = w_head.at[:, :action_size].set(w_mu)
    w_head = w_head.at[:, action_size:2 * action_size].set(w_ls)
    b_head = jnp.zeros((1, _HEAD_LANES), jnp.float32)
    b_head = b_head.at[:, :action_size].set(b_mu)
    b_head = b_head.at[:, action_size:2 * action_size].set(b_ls)

    b_all = jnp.concatenate([b1, b2, b_head], axis=1)   # (1, 640) f32

    return dict(
        w1=w1p.astype(jnp.bfloat16),
        w2=w2.astype(jnp.bfloat16),
        w_head=w_head.astype(jnp.bfloat16),
        b_all=b_all,
        # f32 originals kept for the pure-JAX reference below
        _ref=dict(w1=w1, b1=b1, w2=w2, b2=b2,
                  w_mu=w_mu, b_mu=b_mu, w_ls=w_ls, b_ls=b_ls),
    )


def pi_fc_reference(x, ref, eps):
    """Pure-JAX reference with the same bf16-matmul/f32-elementwise recipe."""
    def mm(a, w):
        return jnp.dot(a.astype(jnp.bfloat16), w.astype(jnp.bfloat16),
                       preferred_element_type=jnp.float32)
    y1 = jnp.maximum(mm(x, ref["w1"]) + ref["b1"], 0.0)
    y2 = jnp.maximum(mm(y1, ref["w2"]) + ref["b2"], 0.0)
    mu = mm(y2, ref["w_mu"]) + ref["b_mu"]
    log_sigma = jnp.clip(mm(y2, ref["w_ls"]) + ref["b_ls"], -20.0, 2.0)
    sigma = jnp.exp(log_sigma)
    x_t = mu + sigma * eps
    logp = -0.5 * eps * eps - log_sigma - 0.5 * math.log(2.0 * math.pi)
    corr = 2.0 * (math.log(2.0) - x_t - _softplus(-2.0 * x_t))
    return jnp.tanh(x_t), jnp.sum(logp - corr, axis=1)


if __name__ == "__main__":
    obs_size, action_size, batch = 32, 8, 64

    root = jax.random.PRNGKey(0)
    k_param, k_x, k_eps = jax.random.split(root, 3)

    params = init_params(k_param, obs_size, action_size)
    x = jax.random.normal(k_x, (batch, obs_size), jnp.float32)
    eps = jax.random.normal(k_eps, (batch, action_size), jnp.float32)

    action, log_prob = pi_fc_forward(x, params, eps)
    jax.block_until_ready((action, log_prob))

    assert action.shape == (batch, action_size)
    assert log_prob.shape == (batch,)
    assert bool(jnp.all(jnp.isfinite(action))) and bool(jnp.all(jnp.isfinite(log_prob)))
    assert bool(jnp.all(jnp.abs(action) <= 1.0))

    # correctness vs pure-JAX reference (same precision recipe)
    a_ref, lp_ref = pi_fc_reference(x, params["_ref"], eps)
    assert bool(jnp.allclose(action, a_ref, atol=2e-2, rtol=2e-2))
    assert bool(jnp.allclose(log_prob, lp_ref, atol=5e-2, rtol=2e-2))

    print("KERNEL_OK")
</pallas_src>

<mosaic_0001>
module attributes {stable_mosaic.version = 11 : i64} {
  func.func @pi_fc_kernel(%arg0: i32, %arg1: memref<32x128xf32, #tpu.memory_space<vmem>>, %arg2: memref<128x256xbf16, #tpu.memory_space<vmem>>, %arg3: memref<256x256xbf16, #tpu.memory_space<vmem>>, %arg4: memref<256x128xbf16, #tpu.memory_space<vmem>>, %arg5: memref<1x640xf32, #tpu.memory_space<vmem>>, %arg6: memref<32x128xf32, #tpu.memory_space<vmem>>) attributes {dimension_semantics = [#tpu.dimension_semantics<parallel>], iteration_bounds = array<i64: 2>, scalar_prefetch = 0 : i64, scratch_operands = 0 : i64, tpu.core_type = #tpu.core_type<tc>, window_params = [{transform_indices = @transform_0, window_bounds = array<i64: 32, 128>}, {pipeline_mode = #tpu.pipeline_mode<synchronous>, transform_indices = @transform_1, window_bounds = array<i64: 128, 256>}, {pipeline_mode = #tpu.pipeline_mode<synchronous>, transform_indices = @transform_2, window_bounds = array<i64: 256, 256>}, {pipeline_mode = #tpu.pipeline_mode<synchronous>, transform_indices = @transform_3, window_bounds = array<i64: 256, 128>}, {pipeline_mode = #tpu.pipeline_mode<synchronous>, transform_indices = @transform_4, window_bounds = array<i64: 1, 640>}, {transform_indices = @transform_5, window_bounds = array<i64: 32, 128>}]} {
    %c0 = arith.constant 0 : index
    %c0_0 = arith.constant 0 : index
    %0 = vector.load %arg5[%c0, %c0_0] : memref<1x640xf32, #tpu.memory_space<vmem>>, vector<1x256xf32>
    %c0_1 = arith.constant 0 : index
    %c256 = arith.constant 256 : index
    %1 = vector.load %arg5[%c0_1, %c256] : memref<1x640xf32, #tpu.memory_space<vmem>>, vector<1x256xf32>
    %c0_2 = arith.constant 0 : index
    %c512 = arith.constant 512 : index
    %2 = vector.load %arg5[%c0_2, %c512] : memref<1x640xf32, #tpu.memory_space<vmem>>, vector<1x128xf32>
    %c0_3 = arith.constant 0 : index
    %c0_4 = arith.constant 0 : index
    %3 = vector.load %arg1[%c0_3, %c0_4] : memref<32x128xf32, #tpu.memory_space<vmem>>, vector<32x128xf32>
    %4 = vector.extract_strided_slice %3 {offsets = [0, 32], sizes = [32, 8], strides = [1, 1]} : vector<32x128xf32> to vector<32x8xf32>
    %5 = arith.truncf %3 : vector<32x128xf32> to vector<32x128xbf16>
    %c0_5 = arith.constant 0 : index
    %c0_6 = arith.constant 0 : index
    %6 = vector.load %arg2[%c0_5, %c0_6] : memref<128x256xbf16, #tpu.memory_space<vmem>>, vector<128x256xbf16>
    %cst = arith.constant dense<0.000000e+00> : vector<32x256xf32>
    %7 = tpu.matmul %5, %6, %cst {dimension_numbers = #tpu.dot_dimension_numbers<[1], [0], [0], [1], [0, 0, 1, 1], [], []>} : vector<32x128xbf16>, vector<128x256xbf16>, vector<32x256xf32> -> vector<32x256xf32>
    %8 = vector.broadcast %0 : vector<1x256xf32> to vector<32x256xf32>
    %9 = arith.addf %7, %8 : vector<32x256xf32>
    %cst_7 = arith.constant 0.000000e+00 : f32
    %10 = vector.broadcast %cst_7 : f32 to vector<32x256xf32>
    %11 = arith.maximumf %9, %10 : vector<32x256xf32>
    %12 = arith.truncf %11 : vector<32x256xf32> to vector<32x256xbf16>
    %c0_8 = arith.constant 0 : index
    %c0_9 = arith.constant 0 : index
    %13 = vector.load %arg3[%c0_8, %c0_9] : memref<256x256xbf16, #tpu.memory_space<vmem>>, vector<256x256xbf16>
    %cst_10 = arith.constant dense<0.000000e+00> : vector<32x256xf32>
    %14 = tpu.matmul %12, %13, %cst_10 {dimension_numbers = #tpu.dot_dimension_numbers<[1], [0], [0], [1], [0, 0, 1, 1], [], []>} : vector<32x256xbf16>, vector<256x256xbf16>, vector<32x256xf32> -> vector<32x256xf32>
    %15 = vector.broadcast %1 : vector<1x256xf32> to vector<32x256xf32>
    %16 = arith.addf %14, %15 : vector<32x256xf32>
    %cst_11 = arith.constant 0.000000e+00 : f32
    %17 = vector.broadcast %cst_11 : f32 to vector<32x256xf32>
    %18 = arith.maximumf %16, %17 : vector<32x256xf32>
    %19 = arith.truncf %18 : vector<32x256xf32> to vector<32x256xbf16>
    %c0_12 = arith.constant 0 : index
    %c0_13 = arith.constant 0 : index
    %20 = vector.load %arg4[%c0_12, %c0_13] : memref<256x128xbf16, #tpu.memory_space<vmem>>, vector<256x128xbf16>
    %cst_14 = arith.constant dense<0.000000e+00> : vector<32x128xf32>
    %21 = tpu.matmul %19, %20, %cst_14 {dimension_numbers = #tpu.dot_dimension_numbers<[1], [0], [0], [1], [0, 0, 1, 1], [], []>} : vector<32x256xbf16>, vector<256x128xbf16>, vector<32x128xf32> -> vector<32x128xf32>
    %22 = vector.broadcast %2 : vector<1x128xf32> to vector<32x128xf32>
    %23 = arith.addf %21, %22 : vector<32x128xf32>
    %24 = vector.extract_strided_slice %23 {offsets = [0, 0], sizes = [32, 8], strides = [1, 1]} : vector<32x128xf32> to vector<32x8xf32>
    %25 = vector.extract_strided_slice %23 {offsets = [0, 8], sizes = [32, 8], strides = [1, 1]} : vector<32x128xf32> to vector<32x8xf32>
    %cst_15 = arith.constant -2.000000e+01 : f32
    %cst_16 = arith.constant 2.000000e+00 : f32
    %26 = vector.broadcast %cst_15 : f32 to vector<32x8xf32>
    %27 = arith.maximumf %26, %25 : vector<32x8xf32>
    %28 = vector.broadcast %cst_16 : f32 to vector<32x8xf32>
    %29 = arith.minimumf %28, %27 : vector<32x8xf32>
    %30 = math.exp %29 : vector<32x8xf32>
    %31 = arith.mulf %30, %4 : vector<32x8xf32>
    %32 = arith.addf %24, %31 : vector<32x8xf32>
    %cst_17 = arith.constant -5.000000e-01 : f32
    %33 = vector.broadcast %cst_17 : f32 to vector<32x8xf32>
    %34 = arith.mulf %33, %4 : vector<32x8xf32>
    %35 = arith.mulf %34, %4 : vector<32x8xf32>
    %36 = arith.subf %35, %29 : vector<32x8xf32>
    %cst_18 = arith.constant 0.918938517 : f32
    %37 = vector.broadcast %cst_18 : f32 to vector<32x8xf32>
    %38 = arith.subf %36, %37 : vector<32x8xf32>
    %cst_19 = arith.constant 0.693147182 : f32
    %39 = vector.broadcast %cst_19 : f32 to vector<32x8xf32>
    %40 = arith.subf %39, %32 : vector<32x8xf32>
    %cst_20 = arith.constant -2.000000e+00 : f32
    %41 = vector.broadcast %cst_20 : f32 to vector<32x8xf32>
    %42 = arith.mulf %41, %32 : vector<32x8xf32>
    %cst_21 = arith.constant 0.000000e+00 : f32
    %43 = vector.broadcast %cst_21 : f32 to vector<32x8xf32>
    %44 = arith.maximumf %42, %43 : vector<32x8xf32>
    %45 = math.absf %42 : vector<32x8xf32>
    %cst_22 = arith.constant 0.000000e+00 : f32
    %46 = vector.broadcast %cst_22 : f32 to vector<32x8xf32>
    %47 = arith.subf %46, %45 : vector<32x8xf32>
    %48 = math.exp %47 : vector<32x8xf32>
    %49 = math.log1p %48 : vector<32x8xf32>
    %50 = arith.addf %44, %49 : vector<32x8xf32>
    %51 = arith.subf %40, %50 : vector<32x8xf32>
    %cst_23 = arith.constant 2.000000e+00 : f32
    %52 = vector.broadcast %cst_23 : f32 to vector<32x8xf32>
    %53 = arith.mulf %52, %51 : vector<32x8xf32>
    %54 = arith.subf %38, %53 : vector<32x8xf32>
    %cst_24 = arith.constant dense<0.000000e+00> : vector<32xf32>
    %55 = vector.multi_reduction <add>, %54, %cst_24 [1] : vector<32x8xf32> to vector<32xf32>
    %56 = vector.shape_cast %55 : vector<32xf32> to vector<32x1xf32>
    %57 = math.tanh %32 : vector<32x8xf32>
    %cst_25 = arith.constant 0.000000e+00 : f32
    %58 = vector.broadcast %cst_25 : f32 to vector<32x120xf32>
    %59 = tpu.concatenate %57, %58 in 1 : vector<32x8xf32>, vector<32x120xf32> -> vector<32x128xf32>
    %60 = tpu.iota {dimensions = array<i32: 1>} : vector<32x128xi32>
    %c8_i32 = arith.constant 8 : i32
    %61 = vector.broadcast %c8_i32 : i32 to vector<32x128xi32>
    %62 = arith.cmpi eq, %60, %61 : vector<32x128xi32>
    %63 = vector.shape_cast %56 : vector<32x1xf32> to vector<32x1xf32>
    %64 = vector.broadcast %63 : vector<32x1xf32> to vector<32x128xf32>
    %65 = arith.select %62, %64, %59 : vector<32x128xi1>, vector<32x128xf32>
    %c0_26 = arith.constant 0 : index
    %c0_27 = arith.constant 0 : index
    %66 = vector.load %arg6[%c0_26, %c0_27] : memref<32x128xf32, #tpu.memory_space<vmem>>, vector<32x128xf32>
    tpu.vector_store %arg6[%c0_26, %c0_27], %65 {strides = array<i32>} : memref<32x128xf32, #tpu.memory_space<vmem>>, vector<32x128xf32>,
    return
  }
  func.func @transform_0(%arg0: i32) -> (i32, i32) {
    %c0_i32 = arith.constant 0 : i32
    %c0_i32_0 = arith.constant 0 : i32
    return %arg0, %c0_i32 : i32, i32
  }
  func.func @transform_1(%arg0: i32) -> (i32, i32) {
    %c0_i32 = arith.constant 0 : i32
    %c0_i32_0 = arith.constant 0 : i32
    %c0_i32_1 = arith.constant 0 : i32
    return %c0_i32, %c0_i32_0 : i32, i32
  }
  func.func @transform_2(%arg0: i32) -> (i32, i32) {
    %c0_i32 = arith.constant 0 : i32
    %c0_i32_0 = arith.constant 0 : i32
    %c0_i32_1 = arith.constant 0 : i32
    return %c0_i32, %c0_i32_0 : i32, i32
  }
  func.func @transform_3(%arg0: i32) -> (i32, i32) {
    %c0_i32 = arith.constant 0 : i32
    %c0_i32_0 = arith.constant 0 : i32
    %c0_i32_1 = arith.constant 0 : i32
    return %c0_i32, %c0_i32_0 : i32, i32
  }
  func.func @transform_4(%arg0: i32) -> (i32, i32) {
    %c0_i32 = arith.constant 0 : i32
    %c0_i32_0 = arith.constant 0 : i32
    %c0_i32_1 = arith.constant 0 : i32
    return %c0_i32, %c0_i32_0 : i32, i32
  }
  func.func @transform_5(%arg0: i32) -> (i32, i32) {
    %c0_i32 = arith.constant 0 : i32
    %c0_i32_0 = arith.constant 0 : i32
    return %arg0, %c0_i32 : i32, i32
  }
}

module attributes {stable_mosaic.version = 11 : i64} {
  func.func @pi_fc_kernel(%arg0: i32, %arg1: memref<32x128xf32, #tpu.memory_space<vmem>>, %arg2: memref<128x256xbf16, #tpu.memory_space<vmem>>, %arg3: memref<256x256xbf16, #tpu.memory_space<vmem>>, %arg4: memref<256x128xbf16, #tpu.memory_space<vmem>>, %arg5: memref<1x640xf32, #tpu.memory_space<vmem>>, %arg6: memref<32x128xf32, #tpu.memory_space<vmem>>) attributes {dimension_semantics = [#tpu.dimension_semantics<parallel>], iteration_bounds = array<i64: 2>, scalar_prefetch = 0 : i64, scratch_operands = 0 : i64, tpu.core_type = #tpu.core_type<tc>, window_params = [{transform_indices = @transform_0, window_bounds = array<i64: 32, 128>}, {pipeline_mode = #tpu.pipeline_mode<synchronous>, transform_indices = @transform_1, window_bounds = array<i64: 128, 256>}, {pipeline_mode = #tpu.pipeline_mode<synchronous>, transform_indices = @transform_2, window_bounds = array<i64: 256, 256>}, {pipeline_mode = #tpu.pipeline_mode<synchronous>, transform_indices = @transform_3, window_bounds = array<i64: 256, 128>}, {pipeline_mode = #tpu.pipeline_mode<synchronous>, transform_indices = @transform_4, window_bounds = array<i64: 1, 640>}, {transform_indices = @transform_5, window_bounds = array<i64: 32, 128>}]} {
    %c0 = arith.constant 0 : index
    %c0_0 = arith.constant 0 : index
    %0 = vector.load %arg5[%c0, %c0_0] : memref<1x640xf32, #tpu.memory_space<vmem>>, vector<1x256xf32>
    %c0_1 = arith.constant 0 : index
    %c256 = arith.constant 256 : index
    %1 = vector.load %arg5[%c0_1, %c256] : memref<1x640xf32, #tpu.memory_space<vmem>>, vector<1x256xf32>
    %c0_2 = arith.constant 0 : index
    %c512 = arith.constant 512 : index
    %2 = vector.load %arg5[%c0_2, %c512] : memref<1x640xf32, #tpu.memory_space<vmem>>, vector<1x128xf32>
    %c0_3 = arith.constant 0 : index
    %c0_4 = arith.constant 0 : index
    %3 = vector.load %arg1[%c0_3, %c0_4] : memref<32x128xf32, #tpu.memory_space<vmem>>, vector<32x128xf32>
    %4 = vector.extract_strided_slice %3 {offsets = [0, 32], sizes = [32, 8], strides = [1, 1]} : vector<32x128xf32> to vector<32x8xf32>
    %5 = arith.truncf %3 : vector<32x128xf32> to vector<32x128xbf16>
    %c0_5 = arith.constant 0 : index
    %c0_6 = arith.constant 0 : index
    %6 = vector.load %arg2[%c0_5, %c0_6] : memref<128x256xbf16, #tpu.memory_space<vmem>>, vector<128x256xbf16>
    %cst = arith.constant dense<0.000000e+00> : vector<32x256xf32>
    %7 = tpu.matmul %5, %6, %cst {dimension_numbers = #tpu.dot_dimension_numbers<[1], [0], [0], [1], [0, 0, 1, 1], [], []>} : vector<32x128xbf16>, vector<128x256xbf16>, vector<32x256xf32> -> vector<32x256xf32>
    %8 = vector.broadcast %0 : vector<1x256xf32> to vector<32x256xf32>
    %9 = arith.addf %7, %8 : vector<32x256xf32>
    %cst_7 = arith.constant 0.000000e+00 : f32
    %10 = vector.broadcast %cst_7 : f32 to vector<32x256xf32>
    %11 = arith.maximumf %9, %10 : vector<32x256xf32>
    %12 = arith.truncf %11 : vector<32x256xf32> to vector<32x256xbf16>
    %c0_8 = arith.constant 0 : index
    %c0_9 = arith.constant 0 : index
    %13 = vector.load %arg3[%c0_8, %c0_9] : memref<256x256xbf16, #tpu.memory_space<vmem>>, vector<256x256xbf16>
    %cst_10 = arith.constant dense<0.000000e+00> : vector<32x256xf32>
    %14 = tpu.matmul %12, %13, %cst_10 {dimension_numbers = #tpu.dot_dimension_numbers<[1], [0], [0], [1], [0, 0, 1, 1], [], []>} : vector<32x256xbf16>, vector<256x256xbf16>, vector<32x256xf32> -> vector<32x256xf32>
    %15 = vector.broadcast %1 : vector<1x256xf32> to vector<32x256xf32>
    %16 = arith.addf %14, %15 : vector<32x256xf32>
    %cst_11 = arith.constant 0.000000e+00 : f32
    %17 = vector.broadcast %cst_11 : f32 to vector<32x256xf32>
    %18 = arith.maximumf %16, %17 : vector<32x256xf32>
    %19 = arith.truncf %18 : vector<32x256xf32> to vector<32x256xbf16>
    %c0_12 = arith.constant 0 : index
    %c0_13 = arith.constant 0 : index
    %20 = vector.load %arg4[%c0_12, %c0_13] : memref<256x128xbf16, #tpu.memory_space<vmem>>, vector<256x128xbf16>
    %cst_14 = arith.constant dense<0.000000e+00> : vector<32x128xf32>
    %21 = tpu.matmul %19, %20, %cst_14 {dimension_numbers = #tpu.dot_dimension_numbers<[1], [0], [0], [1], [0, 0, 1, 1], [], []>} : vector<32x256xbf16>, vector<256x128xbf16>, vector<32x128xf32> -> vector<32x128xf32>
    %22 = vector.broadcast %2 : vector<1x128xf32> to vector<32x128xf32>
    %23 = arith.addf %21, %22 : vector<32x128xf32>
    %24 = vector.extract_strided_slice %23 {offsets = [0, 0], sizes = [32, 8], strides = [1, 1]} : vector<32x128xf32> to vector<32x8xf32>
    %25 = vector.extract_strided_slice %23 {offsets = [0, 8], sizes = [32, 8], strides = [1, 1]} : vector<32x128xf32> to vector<32x8xf32>
    %cst_15 = arith.constant -2.000000e+01 : f32
    %cst_16 = arith.constant 2.000000e+00 : f32
    %26 = vector.broadcast %cst_15 : f32 to vector<32x8xf32>
    %27 = arith.maximumf %26, %25 : vector<32x8xf32>
    %28 = vector.broadcast %cst_16 : f32 to vector<32x8xf32>
    %29 = arith.minimumf %28, %27 : vector<32x8xf32>
    %30 = math.exp %29 : vector<32x8xf32>
    %31 = arith.mulf %30, %4 : vector<32x8xf32>
    %32 = arith.addf %24, %31 : vector<32x8xf32>
    %cst_17 = arith.constant -5.000000e-01 : f32
    %33 = vector.broadcast %cst_17 : f32 to vector<32x8xf32>
    %34 = arith.mulf %33, %4 : vector<32x8xf32>
    %35 = arith.mulf %34, %4 : vector<32x8xf32>
    %36 = arith.subf %35, %29 : vector<32x8xf32>
    %cst_18 = arith.constant 0.918938517 : f32
    %37 = vector.broadcast %cst_18 : f32 to vector<32x8xf32>
    %38 = arith.subf %36, %37 : vector<32x8xf32>
    %cst_19 = arith.constant 0.693147182 : f32
    %39 = vector.broadcast %cst_19 : f32 to vector<32x8xf32>
    %40 = arith.subf %39, %32 : vector<32x8xf32>
    %cst_20 = arith.constant -2.000000e+00 : f32
    %41 = vector.broadcast %cst_20 : f32 to vector<32x8xf32>
    %42 = arith.mulf %41, %32 : vector<32x8xf32>
    %cst_21 = arith.constant 0.000000e+00 : f32
    %43 = vector.broadcast %cst_21 : f32 to vector<32x8xf32>
    %44 = arith.maximumf %42, %43 : vector<32x8xf32>
    %45 = math.absf %42 : vector<32x8xf32>
    %cst_22 = arith.constant 0.000000e+00 : f32
    %46 = vector.broadcast %cst_22 : f32 to vector<32x8xf32>
    %47 = arith.subf %46, %45 : vector<32x8xf32>
    %48 = math.exp %47 : vector<32x8xf32>
    %49 = math.log1p %48 : vector<32x8xf32>
    %50 = arith.addf %44, %49 : vector<32x8xf32>
    %51 = arith.subf %40, %50 : vector<32x8xf32>
    %cst_23 = arith.constant 2.000000e+00 : f32
    %52 = vector.broadcast %cst_23 : f32 to vector<32x8xf32>
    %53 = arith.mulf %52, %51 : vector<32x8xf32>
    %54 = arith.subf %38, %53 : vector<32x8xf32>
    %cst_24 = arith.constant dense<0.000000e+00> : vector<32xf32>
    %55 = vector.multi_reduction <add>, %54, %cst_24 [1] : vector<32x8xf32> to vector<32xf32>
    %56 = vector.shape_cast %55 : vector<32xf32> to vector<32x1xf32>
    %57 = math.tanh %32 : vector<32x8xf32>
    %cst_25 = arith.constant 0.000000e+00 : f32
    %58 = vector.broadcast %cst_25 : f32 to vector<32x120xf32>
    %59 = tpu.concatenate %57, %58 in 1 : vector<32x8xf32>, vector<32x120xf32> -> vector<32x128xf32>
    %60 = tpu.iota {dimensions = array<i32: 1>} : vector<32x128xi32>
    %c8_i32 = arith.constant 8 : i32
    %61 = vector.broadcast %c8_i32 : i32 to vector<32x128xi32>
    %62 = arith.cmpi eq, %60, %61 : vector<32x128xi32>
    %63 = vector.shape_cast %56 : vector<32x1xf32> to vector<32x1xf32>
    %64 = vector.broadcast %63 : vector<32x1xf32> to vector<32x128xf32>
    %65 = arith.select %62, %64, %59 : vector<32x128xi1>, vector<32x128xf32>
    %c0_26 = arith.constant 0 : index
    %c0_27 = arith.constant 0 : index
    %66 = vector.load %arg6[%c0_26, %c0_27] : memref<32x128xf32, #tpu.memory_space<vmem>>, vector<32x128xf32>
    tpu.vector_store %arg6[%c0_26, %c0_27], %65 {strides = array<i32>} : memref<32x128xf32, #tpu.memory_space<vmem>>, vector<32x128xf32>,
    return
  }
  func.func @transform_0(%arg0: i32) -> (i32, i32) {
    %c0_i32 = arith.constant 0 : i32
    %c0_i32_0 = arith.constant 0 : i32
    return %arg0, %c0_i32 : i32, i32
  }
  func.func @transform_1(%arg0: i32) -> (i32, i32) {
    %c0_i32 = arith.constant 0 : i32
    %c0_i32_0 = arith.constant 0 : i32
    %c0_i32_1 = arith.constant 0 : i32
    return %c0_i32, %c0_i32_0 : i32, i32
  }
  func.func @transform_2(%arg0: i32) -> (i32, i32) {
    %c0_i32 = arith.constant 0 : i32
    %c0_i32_0 = arith.constant 0 : i32
    %c0_i32_1 = arith.constant 0 : i32
    return %c0_i32, %c0_i32_0 : i32, i32
  }
  func.func @transform_3(%arg0: i32) -> (i32, i32) {
    %c0_i32 = arith.constant 0 : i32
    %c0_i32_0 = arith.constant 0 : i32
    %c0_i32_1 = arith.constant 0 : i32
    return %c0_i32, %c0_i32_0 : i32, i32
  }
  func.func @transform_4(%arg0: i32) -> (i32, i32) {
    %c0_i32 = arith.constant 0 : i32
    %c0_i32_0 = arith.constant 0 : i32
    %c0_i32_1 = arith.constant 0 : i32
    return %c0_i32, %c0_i32_0 : i32, i32
  }
  func.func @transform_5(%arg0: i32) -> (i32, i32) {
    %c0_i32 = arith.constant 0 : i32
    %c0_i32_0 = arith.constant 0 : i32
    return %arg0, %c0_i32 : i32, i32
  }
}

</mosaic_0001>

<bundles_post_ra>
// kernel: tpu_custom_call.1
= control target key start
LH: loop header
LB: loop body
LE: loop exit
PB: predicated region body
PF: predicated region fallthrough
CT: control target
= control target key end

     0   :  { %10 = vsyncpa [#allocation3], 0  ;;  %s2121_s0 = inlined_call_operand.hbm [shape: f32[64,128], index: 0, kind: input, shape index: {}]   ;;  %s2122_s1 = inlined_call_operand.hbm [shape: bf16[128,256], index: 1, kind: input, shape index: {}]   ;;  %s2123_s2 = inlined_call_operand.hbm [shape: bf16[256,256], index: 2, kind: input, shape index: {}]   ;;  %s2124_s3 = inlined_call_operand.hbm [shape: bf16[256,128], index: 3, kind: input, shape index: {}]   ;;  %s2125_s4 = inlined_call_operand.vmem [shape: f32[1,640], index: 4, kind: input, shape index: {}]   ;;  %s2126_s5 = inlined_call_operand.hbm [shape: f32[64,128], index: 5, kind: output, shape index: {}]  }
   0x1   :  { %12 = vsyncpa [#allocation3 + $0x1], 0 }
   0x2   :  { %13 = vsyncpa [#allocation6], 0 }
   0x3   :  { %14 = vsyncpa [#allocation9], 0 }
   0x4   :  { %15 = vsyncpa [#allocation4], 0 }
   0x5   :  { %17 = vsyncpa [#allocation4 + $0x1], 0  ;;  %s1825_s18 = smov 0   ;;  %s1827_s19 = smov 0  }
   0x6   :  { %s1829_s20 = smov 0   ;;  %s1831_s21 = smov 0  }
   0x7 LB: > { %s1846_s22 = sadd.s32 4294967295, %s1776_s21   ;;  %s1270_s23 = sadd.s32 4294967294, %s1776_s21   ;;  %s1776_s21 = sphi %s1831_s21, %s2151_s21   ;;  %s1772_s20 = sphi %s1829_s20, %s2150_s20   ;;  %s1768_s19 = sphi %s1827_s19, %s2149_s19   ;;  %s1764_s18 = sphi %s1825_s18, %s2148_s18  }
   0x8   : > { %p43_p0 = scmp.ne.s32.totalorder %s1768_s19, %s1764_s18  ;;  %p2127_p1 = scmp.eq.s32.totalorder %s1846_s22, 0 }
   0x9   : > { %p151_p2 = scmp.eq.s32.totalorder %s1846_s22, 1  ;;  %p157_p3 = scmp.eq.s32.totalorder %s1270_s23, 1 }
   0xa   : > { %p1855_p4 = por %p2127_p1, %p43_p0  ;;  %p1271_p5 = scmp.ge.s32.totalorder %s1776_s21, 1 }
   0xb   : > { %p1860_p6 = por %p157_p3, %p43_p0  ;;  %p164_p7 = scmp.lt.s32.totalorder %s1776_s21, 3 }
   0xc   : > { %s2132_s24 = scalar_select %p1855_p4, 1, 0 }
   0xd   : > { %s2133_s25 = scalar_select %p1860_p6, 1, 0 }
   0xe   : > { %p1865_p8 = pnand %p1271_p5, %p164_p7  ;;  %s1778_s27 = smov [#allocation5]  }
   0xf   : > { %s176_s28 = sshll.u32 %s1778_s27, 4  ;;  %s1779_s30 = smov [#allocation7]   ;;  %s177_s28 = int_to_ptr.vmem [resolvable:$true] %s176_s28 }
  0x10   : > { %s2134_s26 = scalar_select %p1865_p8, 1, 0 }
  0x11   : > { %p1405_p9 = pneg %p1865_p8  ;;  %s189_s6 = sshll.u32 %s1779_s30, 4  ;;  %s190_s6 = int_to_ptr.vmem [resolvable:$true] %s189_s6 }
  0x12   : > { %s1780_s7 = smov [#allocation8]   ;;  %s1609_s9 = scalar_lea.vmem %s177_s28, 2048 }
  0x13   : > { %p1874_p11 = pnand %p1405_p9, %p2127_p1  ;;  %s202_s8 = sshll.u32 %s1780_s7, 4  ;;  %s203_s8 = int_to_ptr.vmem [resolvable:$true] %s202_s8 }
  0x14   : > { %p1610_p13 = scmp.ne.s32.totalorder %s177_s28, %s1609_s9  ;;  %p1617_p5 = scmp.lt.s32.totalorder %s177_s28, %s177_s28 }
  0x15   : > { %p1600_p12 = pneg %p1874_p11  ;;  %p1618_p7 = scmp.lt.s32.totalorder %s1609_s9, %s1609_s9 }
  0x17   : > { %p1612_p0 = pnand %p1610_p13, %p1600_p12  ;;  %p1619_p9 = por %p1618_p7, %p1617_p5 }
  0x19   : > { %p1613_p3 = pneg %p1612_p0 }
  0x1b   : > { %p1620_p10 = pnand %p1619_p9, %p1613_p3 }
  0x1d   : > { %1623 = shalt.err (!%p1620_p10)
}
  0x1e   : > { %s2128_s10 = smov 128   ;;  %s1782_s11 = smov 8  }
  0x1f   : > { %1408 = dma.hbm_to_vmem [thread:$0]  (!%p1874_p11), %s2122_s1, 2048, %s177_s28, [#allocation6], %s2128_s10, %s2128_s10, %s1782_s11  }
  0x20   : > { %s1635_s14 = scalar_lea.vmem %s190_s6, 4096  ;;  %p1643_p3 = scmp.lt.s32.totalorder %s190_s6, %s190_s6 }
  0x21   : > { %p1636_p13 = scmp.ne.s32.totalorder %s190_s6, %s1635_s14  ;;  %p1644_p10 = scmp.lt.s32.totalorder %s1635_s14, %s1635_s14 }
  0x23   : > { %p1638_p0 = pnand %p1636_p13, %p1600_p12  ;;  %p1645_p7 = por %p1644_p10, %p1643_p3 }
  0x25   : > { %p1639_p5 = pneg %p1638_p0 }
  0x27   : > { %p1646_p9 = pnand %p1645_p7, %p1639_p5 }
  0x29   : > { %1649 = shalt.err (!%p1646_p9)
}
  0x2a   : > { %1411 = dma.hbm_to_vmem [thread:$0]  (!%p1874_p11), %s2123_s2, 4096, %s190_s6, [#allocation6], %s2128_s10, %s2128_s10, %s1782_s11  }
  0x2b   : > { %s1661_s17 = scalar_lea.vmem %s203_s8, 2048  ;;  %p1669_p3 = scmp.lt.s32.totalorder %s203_s8, %s203_s8 }
  0x2c   : > { %p1662_p1 = scmp.ne.s32.totalorder %s203_s8, %s1661_s17  ;;  %p1670_p5 = scmp.lt.s32.totalorder %s1661_s17, %s1661_s17 }
  0x2e   : > { %p1664_p13 = pnand %p1662_p1, %p1600_p12  ;;  %p1671_p10 = por %p1670_p5, %p1669_p3 }
  0x30   : > { %p1665_p0 = pneg %p1664_p13 }
  0x32   : > { %p1672_p7 = pnand %p1671_p10, %p1665_p0 }
  0x34   : > { %1675 = shalt.err (!%p1672_p7)
}
  0x35   : > { %s1783_s23 = smov 64   ;;  %s1784_s27 = smov 4  }
  0x36   : > { %1414 = dma.hbm_to_vmem [thread:$0]  (!%p1874_p11), %s2124_s3, 2048, %s203_s8, [#allocation9], %s1783_s23, %s1783_s23, %s1784_s27  }
  0x37   : > { %s1911_s6 = sadd.s32 1, %s1776_s21   ;;  %s30_s9 = sadd.s32 1, %s1772_s20 }
  0x38   : > { %s27_s7 = ssub.s32 %s1776_s21, %s1911_s6  ;;  %p37_p12 = scmp.ne.s32.totalorder %s1772_s20, %s1768_s19 }
  0x39   : > { %p28_p1 = scmp.eq.s32.totalorder %s27_s7, 0  ;;  %p38_p9 = scmp.eq.s32.totalorder %s1776_s21, 0 }
  0x3a   : > { %p1426_p13 = scmp.lt.s32.totalorder %s1776_s21, 2  ;;  %p1925_p3 = por %p151_p2, %p37_p12 }
  0x3b   : > { %s1921_s12 = scalar_select %p28_p1, %s1772_s20, %s30_s9  }
  0x3c   : > { %p39_p0 = por %p38_p9, %p37_p12  ;;  %s219_s29 = sand.u32 1, %s1772_s20  }
  0x3d   : > { %s2136_s13 = scalar_select %p1925_p3, 1, 0 }
  0x3e   : > { %s1359_s14 = sshll.u32 %s1776_s21, 9  ;;  %s1276_s8 = sshll.u32 %s219_s29, 5 }
  0x3f   : > { %s1934_s17 = scalar_lea.hbm %s2121_s0, %s1359_s14  ;;  %s223_s23 = scalar_lea.vmem [#allocation2], %s1276_s8 }
  0x40   : > { %s230_s27 = sshll.u32 %s223_s23, 4  ;;  %p1936_p11 = pnand %p1426_p13, %p39_p0  ;;  %s1940_s27 = int_to_ptr.vmem [resolvable:$true] %s230_s27 }
  0x41   : > { %s1942_s30 = scalar_lea.sflag [#allocation3], %s219_s29  ;;  %s1676_s7 = scalar_lea.hbm %s1934_s17, 512 }
  0x42   : > { %p1677_p2 = scmp.ne.s32.totalorder %s1934_s17, %s1676_s7  ;;  %p1678_p5 = pneg %p1936_p11 }
  0x43   : > { %s1681_s8 = scalar_lea.hbm %s2121_s0, 1024  ;;  %p1682_p1 = scmp.lt.s32.totalorder %s1934_s17, %s2121_s0 }
  0x44   : > { %p1679_p10 = pnand %p1678_p5, %p1677_p2  ;;  %p1683_p12 = scmp.lt.s32.totalorder %s1681_s8, %s1676_s7 }
  0x46   : > { %p1680_p7 = pneg %p1679_p10  ;;  %p1684_p9 = por %p1683_p12, %p1682_p1 }
  0x48   : > { %p1685_p13 = pnand %p1684_p9, %p1680_p7 }
  0x4a   : > { %1688 = shalt.err (!%p1685_p13)
}
  0x4b   : > { %s1689_s29 = scalar_lea.vmem %s1940_s27, 512  ;;  %s1785_s23 = smov [#allocation2]  }
  0x4c   : > { %p1690_p0 = scmp.ne.s32.totalorder %s1940_s27, %s1689_s29  ;;  %s1694_s10 = sshll.u32 %s1785_s23, 4  ;;  %s1695_s10 = int_to_ptr.vmem [resolvable:$false] %s1694_s10 }
  0x4d   : > { %s1696_s9 = scalar_lea.vmem %s1695_s10, 1024  ;;  %p1697_p10 = scmp.lt.s32.totalorder %s1940_s27, %s1695_s10 }
  0x4e   : > { %p1692_p6 = pnand %p1690_p0, %p1678_p5  ;;  %p1698_p3 = scmp.lt.s32.totalorder %s1696_s9, %s1689_s29 }
  0x50   : > { %p1693_p2 = pneg %p1692_p6  ;;  %p1699_p4 = por %p1698_p3, %p1697_p10 }
  0x52   : > { %p1700_p8 = pnand %p1699_p4, %p1693_p2 }
  0x54   : > { %1703 = shalt.err (!%p1700_p8)
}
  0x55   : > { %s2138_s7 = smov 128   ;;  %p2139_p6 = scmp.ne.s32.totalorder %s2134_s26, 0 }
  0x56   : > { %1418 = dma.hbm_to_vmem [thread:$0]  (!%p1936_p11), %s1934_s17, 512, %s1940_s27, %s1942_s30, %s2138_s7, %s2138_s7, %s1782_s11  }
  0x57   : > { %242 = sbr.rel (%p2139_p6) target bundleno = 1328 (0x530), region = 40  ;;  %s1969_s14 = sand.u32 (!%p2139_p6), 1, %s1768_s19  }
  0x58   : > { %s1280_s10 = sshll.u32 (!%p2139_p6), %s1969_s14, 5  ;;  %s245_s8 = scalar_lea.sflag (!%p2139_p6), [#allocation3], %s1969_s14 }
  0x59   : > { %s1975_s28 = scalar_lea.vmem (!%p2139_p6), [#allocation2], %s1280_s10  ;;  %p2140_p4 = scmp.ne.s32.totalorder (!%p2139_p6), %s2132_s24, 0 }
  0x5c   : > { %1747 = dma.done.wait (%p2140_p4), %s245_s8, 512  }
  0x5d   : > { %1749 = vsyncadd (%p2140_p4), %s245_s8, 4294966784  ;;  %p2141_p8 = scmp.eq.s32.totalorder %s1846_s22, 0 }
  0x5f   : > { %1751 = dma.done.wait (%p2141_p8), [#allocation6], 6144   ;;  %p2142_p3 = pmov %p2141_p8 }
  0x61   : > { %1753 = vsyncadd (%p2142_p3), [#allocation6], 4294961152  ;;  %p2143_p11 = pmov %p2142_p3 }
  0x62   : > { %p2144_p5 = pmov %p2142_p3 }
  0x63   : > { %1755 = dma.done.wait (%p2143_p11), [#allocation9], 2048  }
  0x64   : > { %1757 = vsyncadd (%p2144_p5), [#allocation9], 4294965248  ;;  %v1786_v0 = vmov 0   ;;  %v1478_v1 = vld [vmem:[#allocation5 + $0x74] ss:$8 sps:$4 sm:$0xff]   ;;  %v1991_v26 = vld [vmem:[%s1975_s28] sm:$0xff] }
  0x65   : > { %438 = vmatprep.mubr.bf16.mxu0 %v1786_v0  ;;  %v1480_v2 = vld [vmem:[#allocation5 + $0x70] ss:$8 sps:$4 sm:$0xff]   ;;  %406 = vmatprep.subr.bf16.mxu0 %v1478_v1  ;;  %v1481_v3 = vld [vmem:[#allocation5 + $0x64] ss:$8 sps:$4 sm:$0xff]   ;;  %v1483_v4 = vld [vmem:[#allocation5 + $0x60] ss:$8 sps:$4 sm:$0xff]   ;;  %v316_v1 = vlaneseq }
  0x66   : > { %407 = vmatpush1.bf16.msra.mxu0 %v1480_v2  ;;  %v1484_v5 = vld [vmem:[#allocation5 + $0x54] ss:$8 sps:$4 sm:$0xff]   ;;  %v1486_v6 = vld [vmem:[#allocation5 + $0x50] ss:$8 sps:$4 sm:$0xff]   ;;  %v1487_v7 = vld [vmem:[#allocation5 + $0x44] ss:$8 sps:$4 sm:$0xff]  }
  0x67   : > { %408 = vmatprep.subr.bf16.mxu0 %v1481_v3  ;;  %v1489_v8 = vld [vmem:[#allocation5 + $0x40] ss:$8 sps:$4 sm:$0xff]   ;;  %v1490_v9 = vld [vmem:[#allocation5 + $0x34] ss:$8 sps:$4 sm:$0xff]   ;;  %v1504_v11 = vld [vmem:[#allocation7 + $0x70] ss:$8 sps:$4 sm:$0xff]  }
  0x68   : > { %v1502_v10 = vld [vmem:[#allocation7 + $0x74] ss:$8 sps:$4 sm:$0xff]   ;;  %v1492_v12 = vld [vmem:[#allocation5 + $0x30] ss:$8 sps:$4 sm:$0xff]   ;;  %v1505_v13 = vld [vmem:[#allocation7 + $0x64] ss:$8 sps:$4 sm:$0xff]  }
  0x69   : > { %674 = vmatprep.subr.bf16.mxu1 %v1502_v10  ;;  %v1493_v14 = vld [vmem:[#allocation5 + $0x24] ss:$8 sps:$4 sm:$0xff]   ;;  %v1507_v15 = vld [vmem:[#allocation7 + $0x60] ss:$8 sps:$4 sm:$0xff]   ;;  %v1508_v16 = vld [vmem:[#allocation7 + $0x54] ss:$8 sps:$4 sm:$0xff]  }
  0x6a   : > { %409 = vmatpush1.bf16.msra.mxu0 %v1483_v4  ;;  %675 = vmatpush1.bf16.msra.mxu1 %v1504_v11  ;;  %v1495_v17 = vld [vmem:[#allocation5 + $0x20] ss:$8 sps:$4 sm:$0xff]   ;;  %v1496_v18 = vld [vmem:[#allocation5 + $0x14] ss:$8 sps:$4 sm:$0xff]   ;;  %v1510_v19 = vld [vmem:[#allocation7 + $0x50] ss:$8 sps:$4 sm:$0xff]  }
  0x6b   : > { %410 = vmatprep.subr.bf16.mxu0 %v1484_v5  ;;  %676 = vmatprep.subr.bf16.mxu1 %v1505_v13  ;;  %v1511_v20 = vld [vmem:[#allocation7 + $0x44] ss:$8 sps:$4 sm:$0xff]   ;;  %v1498_v21 = vld [vmem:[#allocation5 + $0x10] ss:$8 sps:$4 sm:$0xff]   ;;  %v1513_v23 = vld [vmem:[#allocation7 + $0x40] ss:$8 sps:$4 sm:$0xff]  }
  0x6c   : > { %v1499_v22 = vld [vmem:[#allocation5 + $0x4] ss:$8 sps:$4 sm:$0xff]   ;;  %v1514_v24 = vld [vmem:[#allocation7 + $0x34] ss:$8 sps:$4 sm:$0xff]   ;;  %v1501_v25 = vld [vmem:[#allocation5] ss:$8 sps:$4 sm:$0xff]  }
  0x6d   : > { %v1994_v27 = vld [vmem:[%s1975_s28 + $0x8] sm:$0xff]  ;;  %v1516_v28 = vld [vmem:[#allocation7 + $0x30] ss:$8 sps:$4 sm:$0xff]   ;;  %v1520_v32 = vld [vmem:[#allocation7 + $0x14] ss:$8 sps:$4 sm:$0xff]   ;;  %v317_v2 = vshrl.u32 %v316_v1, 7 }
  0x6e   : > { %411 = vmatpush1.bf16.msra.mxu0 %v1486_v6  ;;  %677 = vmatpush1.bf16.msra.mxu1 %v1507_v15  ;;  %v1517_v29 = vld [vmem:[#allocation7 + $0x24] ss:$8 sps:$4 sm:$0xff]   ;;  %v1519_v30 = vld [vmem:[#allocation7 + $0x20] ss:$8 sps:$4 sm:$0xff]   ;;  %v297_v31 = vpack.c.bf16 %v1994_v27, %v1991_v26  ;;  %v1999_v33 = vld [vmem:[%s1975_s28 + $0x10] sm:$0xff]  ;;  %s1787_s11 = smov 104  }
  0x6f   : > { %412 = vmatprep.subr.bf16.mxu0 %v1487_v7  ;;  %678 = vmatprep.subr.bf16.mxu1 %v1508_v16  ;;  %v2002_v34 = vld [vmem:[%s1975_s28 + $0x18] sm:$0xff]  ;;  %v1523_v36 = vld [vmem:[#allocation7 + $0x4] ss:$8 sps:$4 sm:$0xff]   ;;  %v1525_v37 = vld [vmem:[#allocation7] ss:$8 sps:$4 sm:$0xff]   ;;  %v322_v3 = vsub.s32 1, %v317_v2 }
  0x70   : > { %v1522_v35 = vld [vmem:[#allocation7 + $0x10] ss:$8 sps:$4 sm:$0xff]   ;;  %v298_v38 = vpack.c.bf16 %v2002_v34, %v1999_v33  ;;  %v1526_v39 = vld [vmem:[#allocation7 + $0xf4] ss:$8 sps:$4 sm:$0xff]   ;;  %v1529_v41 = vld [vmem:[#allocation7 + $0xe4] ss:$8 sps:$4 sm:$0xff]   ;;  %942 = vrot.lane.b32.xlu0 %v1991_v26, %s1787_s11  ;;  %946 = vrot.lane.b32.xlu1 %v1999_v33, %s1787_s11 }
  0x71   : > { %v1528_v40 = vld [vmem:[#allocation7 + $0xf0] ss:$8 sps:$4 sm:$0xff]   ;;  %v1531_v42 = vld [vmem:[#allocation7 + $0xe0] ss:$8 sps:$4 sm:$0xff]   ;;  %v1532_v43 = vld [vmem:[#allocation7 + $0xd4] ss:$8 sps:$4 sm:$0xff]  }
  0x72   : > { %413 = vmatpush1.bf16.msra.mxu0 %v1489_v8  ;;  %679 = vmatpush1.bf16.msra.mxu1 %v1510_v19  ;;  %v1534_v44 = vld [vmem:[#allocation7 + $0xd0] ss:$8 sps:$4 sm:$0xff]   ;;  %v1535_v45 = vld [vmem:[#allocation7 + $0xc4] ss:$8 sps:$4 sm:$0xff]   ;;  %v1537_v46 = vld [vmem:[#allocation7 + $0xc0] ss:$8 sps:$4 sm:$0xff]  }
  0x73   : > { %414 = vmatprep.subr.bf16.mxu0 %v1490_v9  ;;  %680 = vmatprep.subr.bf16.mxu1 %v1511_v20  ;;  %v1538_v47 = vld [vmem:[#allocation7 + $0xb4] ss:$8 sps:$4 sm:$0xff]   ;;  %v1540_v48 = vld [vmem:[#allocation7 + $0xb0] ss:$8 sps:$4 sm:$0xff]   ;;  %v1541_v49 = vld [vmem:[#allocation7 + $0xa4] ss:$8 sps:$4 sm:$0xff]  }
  0x74   : > { %v1543_v50 = vld [vmem:[#allocation7 + $0xa0] ss:$8 sps:$4 sm:$0xff]   ;;  %v1544_v51 = vld [vmem:[#allocation7 + $0x94] ss:$8 sps:$4 sm:$0xff]   ;;  %v1546_v52 = vld [vmem:[#allocation7 + $0x90] ss:$8 sps:$4 sm:$0xff]   ;;  %944 = vrot.lane.b32.xlu0 %v1994_v27, %s1787_s11  ;;  %948 = vrot.lane.b32.xlu1 %v2002_v34, %s1787_s11 }
  0x75   : > { %v1547_v53 = vld [vmem:[#allocation7 + $0x84] ss:$8 sps:$4 sm:$0xff]   ;;  %v1549_v54 = vld [vmem:[#allocation7 + $0x80] ss:$8 sps:$4 sm:$0xff]   ;;  %v1550_v55 = vld [vmem:[#allocation8 + $0x78] sm:$0xff]   ;;  %v318_v4 = vsub.s32 0, %v317_v2 }
  0x76   : > { %415 = vmatpush1.bf16.msra.mxu0 %v1492_v12  ;;  %681 = vmatpush1.bf16.msra.mxu1 %v1513_v23  ;;  %v1551_v56 = vld [vmem:[#allocation8 + $0x38] sm:$0xff]   ;;  %v1552_v57 = vld [vmem:[#allocation8 + $0x70] sm:$0xff]   ;;  %v1554_v59 = vld [vmem:[#allocation8 + $0x68] sm:$0xff]   ;;  %s1788_s16 = smov 120   ;;  %s1789_s29 = smov 24   ;;  %vm1122_vm4 = vcmask 64512  }
  0x77   : > { %416 = vmatprep.subr.bf16.mxu0 %v1493_v14  ;;  %682 = vmatprep.subr.bf16.mxu1 %v1514_v24  ;;  %v1553_v58 = vld [vmem:[#allocation8 + $0x30] sm:$0xff]   ;;  %v1555_v60 = vld [vmem:[#allocation8 + $0x28] sm:$0xff]   ;;  %v1556_v61 = vld [vmem:[#allocation8 + $0x60] sm:$0xff]   ;;  %s1790_s23 = smov 32   ;;  %s1791_s9 = smov 96  }
  0x78   : > { %v1557_v62 = vld [vmem:[#allocation8 + $0x20] sm:$0xff]   ;;  %v1558_v63 = vld [vmem:[#allocation8 + $0x58] sm:$0xff]   ;;  %s286_s7 = scalar_lea.vmem [#allocation10], %s1280_s10  ;;  %s1360_s28 = sshll.u32 %s1846_s22, 9 }
  0x79   : > { %v290_v5 = vld [vmem:[%s2125_s4] sm:$0x3]  ;;  %s1168_s8 = sshll.u32 %s286_s7, 4  ;;  %s2076_s26 = scalar_lea.hbm %s2126_s5, %s1360_s28  ;;  %s2071_s8 = int_to_ptr.vmem [resolvable:$true] %s1168_s8 }
  0x7a   : > { %417 = vmatpush1.bf16.msra.mxu0 %v1495_v17  ;;  %683 = vmatpush1.bf16.msra.mxu1 %v1516_v28  ;;  %v323_v7 = vrot.slane %v290_v5, %v322_v3  ;;  %v319_v8 = vrot.slane %v290_v5, %v318_v4  ;;  %s1155_s22 = scalar_lea.sflag [#allocation4], %s1969_s14  ;;  %s1704_s11 = scalar_lea.vmem %s2071_s8, 512 }
  0x7b   : > { %418 = vmatprep.subr.bf16.mxu0 %v1496_v18  ;;  %684 = vmatprep.subr.bf16.mxu1 %v1517_v29  ;;  %p1705_p7 = scmp.ne.s32.totalorder %s2071_s8, %s1704_s11  ;;  %p2145_p1 = scmp.ne.s32.totalorder %s2136_s13, 0 }
  0x7c   : > { %s1792_s17 = smov [#allocation10]  }
  0x7d   : > { %p1706_p12 = pnand %p1705_p7, %p2145_p1  ;;  %s1708_s27 = sshll.u32 %s1792_s17, 4  ;;  %s1709_s27 = int_to_ptr.vmem [resolvable:$false] %s1708_s27 }
  0x7e   : > { %419 = vmatpush1.bf16.msra.mxu0 %v1498_v21  ;;  %685 = vmatpush1.bf16.msra.mxu1 %v1519_v30  ;;  %s1710_s30 = scalar_lea.vmem %s1709_s27, 1024  ;;  %p1711_p13 = scmp.lt.s32.totalorder %s2071_s8, %s1709_s27 }
  0x7f   : > { %420 = vmatprep.subr.bf16.mxu0 %v1499_v22  ;;  %686 = vmatprep.subr.bf16.mxu1 %v1520_v32  ;;  %p1707_p9 = pneg %p1706_p12  ;;  %p1712_p0 = scmp.lt.s32.totalorder %s1710_s30, %s1704_s11 }
  0x81   : > { %p1713_p2 = por %p1712_p0, %p1711_p13 }
  0x82   : > { %421 = vmatpush1.bf16.msra.mxu0 %v1501_v25  ;;  %687 = vmatpush1.bf16.msra.mxu1 %v1522_v35 }
  0x83   : > { %688 = vmatprep.subr.bf16.mxu1 %v1523_v36  ;;  %1361 = vmatprep.subr.bf16.mxu0 %v1550_v55  ;;  %p1714_p10 = pnand %p1713_p2, %p1707_p9 }
  0x85   : > { %439 = vmatmul.mubr.bf16.vlgmr.msra.gmra.mxu0 %v297_v31 }
  0x86   : > { %448 = vmatprep.mubr.bf16.mxu0 %v1786_v0  ;;  %689 = vmatpush1.bf16.msra.mxu1 %v1525_v37  ;;  %v1559_v0 = vld [vmem:[#allocation8 + $0x18] sm:$0xff]  }
  0x87   : > { %690 = vmatprep.subr.bf16.mxu1 %v1526_v39  ;;  %1362 = vmatpush3.bf16.msra.mxu0 %v1551_v56 }
  0x88   : > { %1363 = vmatprep.subr.bf16.mxu0 %v1552_v57 }
  0x8a   : > { %691 = vmatpush2.bf16.msra.mxu1 %v1528_v40  ;;  %v1560_v40 = vld [vmem:[#allocation8 + $0x50] sm:$0xff]  }
  0x8b   : > { %692 = vmatprep.subr.bf16.mxu1 %v1529_v41  ;;  %1364 = vmatpush3.bf16.msra.mxu0 %v1553_v58  ;;  %v1561_v41 = vld [vmem:[#allocation8 + $0x10] sm:$0xff]  }
  0x8c   : > { %1365 = vmatprep.subr.bf16.mxu0 %v1554_v59 }
  0x8d   : > { %449 = vmatmul.mubr.bf16.gmra.mxu0 %v298_v38 }
  0x8e   : > { %693 = vmatpush2.bf16.msra.mxu1 %v1531_v42  ;;  %v1562_v42 = vld [vmem:[#allocation8 + $0x48] sm:$0xff]  }
  0x8f   : > { %694 = vmatprep.subr.bf16.mxu1 %v1532_v43  ;;  %1366 = vmatpush3.bf16.msra.mxu0 %v1555_v60  ;;  %v1563_v43 = vld [vmem:[#allocation8 + $0x8] sm:$0xff]  }
  0x90   : > { %1367 = vmatprep.subr.bf16.mxu0 %v1556_v61 }
  0x92   : > { %695 = vmatpush2.bf16.msra.mxu1 %v1534_v44  ;;  %v1564_v44 = vld [vmem:[#allocation8 + $0x40] sm:$0xff]  }
  0x93   : > { %696 = vmatprep.subr.bf16.mxu1 %v1535_v45  ;;  %1368 = vmatpush3.bf16.msra.mxu0 %v1557_v62  ;;  %v1565_v45 = vld [vmem:[#allocation8] sm:$0xff]  }
  0x94   : > { %1369 = vmatprep.subr.bf16.mxu0 %v1558_v63 }
  0x96   : > { %697 = vmatpush2.bf16.msra.mxu1 %v1537_v46  ;;  %v291_v46 = vld [vmem:[%s2125_s4 + $0x2] sm:$0x3] }
  0x97   : > { %698 = vmatprep.subr.bf16.mxu1 %v1538_v47  ;;  %1370 = vmatpush3.bf16.msra.mxu0 %v1559_v0 }
  0x98   : > { %1371 = vmatprep.subr.bf16.mxu0 %v1560_v40 }
  0x9a   : > { %699 = vmatpush2.bf16.msra.mxu1 %v1540_v48  ;;  %v511_v48 = vrot.slane %v291_v46, %v322_v3 }
  0x9b   : > { %700 = vmatprep.subr.bf16.mxu1 %v1541_v49  ;;  %1372 = vmatpush3.bf16.msra.mxu0 %v1561_v41  ;;  %v507_v49 = vrot.slane %v291_v46, %v318_v4 }
  0x9c   : > { %1373 = vmatprep.subr.bf16.mxu0 %v1562_v42 }
  0x9e   : > { %701 = vmatpush2.bf16.msra.mxu1 %v1543_v50 }
  0x9f   : > { %702 = vmatprep.subr.bf16.mxu1 %v1544_v51  ;;  %1374 = vmatpush3.bf16.msra.mxu0 %v1563_v43 }
  0xa0   : > { %1375 = vmatprep.subr.bf16.mxu0 %v1564_v44 }
  0xa2   : > { %703 = vmatpush2.bf16.msra.mxu1 %v1546_v52 }
  0xa3   : > { %704 = vmatprep.subr.bf16.mxu1 %v1547_v53  ;;  %1376 = vmatpush3.bf16.msra.mxu0 %v1565_v45 }
  0xa6   : > { %705 = vmatpush2.bf16.msra.mxu1 %v1549_v54 }
  0xe2   : > { %v943_v46 = vpop.permute.xlu0 %942 }
 0x145   : > { %v440_v6 = vpop.f32.mrf.mxu0 }
 0x146   : > { %v441_v13 = vadd.f32 %v440_v6, %v319_v8 }
 0x147   : > { %v442_v9 = vpop.f32.mrf.mxu0 }
 0x148   : > { %v443_v11 = vadd.f32 %v442_v9, %v323_v7  ;;  %v459_v20 = vmax.f32 %v441_v13, 0.0 }
 0x149   : > { %v444_v10 = vpop.f32.mrf.mxu0 }
 0x14a   : > { %v445_v12 = vadd.f32 %v444_v10, %v319_v8  ;;  %v460_v18 = vmax.f32 %v443_v11, 0.0 }
 0x14b   : > { %v446_v14 = vpop.f32.mrf.mxu0 }
 0x14c   : > { %v447_v15 = vadd.f32 %v446_v14, %v323_v7  ;;  %v461_v16 = vmax.f32 %v445_v12, 0.0 }
 0x14d   : > { %v450_v17 = vpop.f32.mrf.mxu0 }
 0x14e   : > { %v462_v19 = vmax.f32 %v447_v15, 0.0  ;;  %v467_v23 = vpack.c.bf16 %v461_v16, %v459_v20  ;;  %v451_v29 = vadd.f32 %v450_v17, %v319_v8  ;;  %v1333_v15 = vld [vmem:[%s2125_s4 + $0x4] ss:$0 sm:$0xff] }
 0x14f   : > { %v452_v21 = vpop.f32.mrf.mxu0 }
 0x150   : > { %v468_v22 = vpack.c.bf16 %v462_v19, %v460_v18  ;;  %v453_v25 = vadd.f32 %v452_v21, %v323_v7  ;;  %v463_v37 = vmax.f32 %v451_v29, 0.0 }
 0x151   : > { %v454_v24 = vpop.f32.mrf.mxu0 }
 0x152   : > { %v455_v28 = vadd.f32 %v454_v24, %v319_v8  ;;  %706 = vmatprep.mubr.bf16.mxu1 %v468_v22  ;;  %v464_v35 = vmax.f32 %v453_v25, 0.0 }
 0x153   : > { %v456_v30 = vpop.f32.mrf.mxu0  ;;  %707 = vmatmul.mubr.bf16.vlgmr.msra.gmra.mxu1 %v467_v23 }
 0x154   : > { %v457_v31 = vadd.f32 %v456_v30, %v323_v7  ;;  %v465_v32 = vmax.f32 %v455_v28, 0.0 }
 0x156   : > { %v466_v36 = vmax.f32 %v457_v31, 0.0  ;;  %v469_v39 = vpack.c.bf16 %v465_v32, %v463_v37 }
 0x158   : > { %v470_v38 = vpack.c.bf16 %v466_v36, %v464_v35 }
 0x15a   : > { %716 = vmatprep.mubr.bf16.mxu1 %v470_v38 }
 0x15b   : > { %717 = vmatmul.mubr.bf16.gmra.mxu1 %v469_v39 }
 0x213   : > { %v708_v47 = vpop.f32.mrf.mxu1 }
 0x214   : > { %v709_v54 = vadd.f32 %v708_v47, %v507_v49 }
 0x215   : > { %v710_v50 = vpop.f32.mrf.mxu1 }
 0x216   : > { %v711_v52 = vadd.f32 %v710_v50, %v511_v48  ;;  %v727_v61 = vmax.f32 %v709_v54, 0.0  ;;  %v945_v50 = vpop.permute.xlu0 %944 }
 0x217   : > { %v712_v51 = vpop.f32.mrf.mxu1 }
 0x218   : > { %v713_v53 = vadd.f32 %v712_v51, %v507_v49  ;;  %v728_v59 = vmax.f32 %v711_v52, 0.0  ;;  %v947_v52 = vpop.permute.xlu1 %946 }
 0x219   : > { %v714_v55 = vpop.f32.mrf.mxu1 }
 0x21a   : > { %v715_v56 = vadd.f32 %v714_v55, %v511_v48  ;;  %v729_v57 = vmax.f32 %v713_v53, 0.0 }
 0x21b   : > { %v718_v58 = vpop.f32.mrf.mxu1 }
 0x21c   : > { %v730_v60 = vmax.f32 %v715_v56, 0.0  ;;  %v735_v0 = vpack.c.bf16 %v729_v57, %v727_v61  ;;  %v719_v3 = vadd.f32 %v718_v58, %v507_v49  ;;  %v949_v56 = vpop.permute.xlu1 %948 }
 0x21d   : > { %v720_v62 = vpop.f32.mrf.mxu1 }
 0x21e   : > { %v736_v63 = vpack.c.bf16 %v730_v60, %v728_v59  ;;  %v721_v5 = vadd.f32 %v720_v62, %v511_v48  ;;  %v731_v11 = vmax.f32 %v719_v3, 0.0 }
 0x21f   : > { %v722_v2 = vpop.f32.mrf.mxu1 }
 0x220   : > { %v723_v6 = vadd.f32 %v722_v2, %v507_v49  ;;  %905 = vmatprep.mubr.bf16.mxu0 %v736_v63  ;;  %v732_v9 = vmax.f32 %v721_v5, 0.0 }
 0x221   : > { %v724_v4 = vpop.f32.mrf.mxu1  ;;  %906 = vmatmul.mubr.bf16.vlgmr.msra.gmra.mxu0 %v735_v0 }
 0x222   : > { %v725_v7 = vadd.f32 %v724_v4, %v511_v48  ;;  %v733_v8 = vmax.f32 %v723_v6, 0.0 }
 0x224   : > { %v734_v10 = vmax.f32 %v725_v7, 0.0  ;;  %v737_v13 = vpack.c.bf16 %v733_v8, %v731_v11 }
 0x226   : > { %v738_v12 = vpack.c.bf16 %v734_v10, %v732_v9 }
 0x228   : > { %913 = vmatprep.mubr.bf16.mxu0 %v738_v12 }
 0x229   : > { %914 = vmatmul.mubr.bf16.gmra.mxu0 %v737_v13 }
 0x2e1   : > { %v1377_v14 = vpop.f32.mrf.mxu0 }
 0x2e3   : > { %v1378_v16 = vpop.f32.mrf.mxu0 }
 0x2e4   : > { %v1379_v17 = vadd.f32 %v1378_v16, %v1377_v14 }
 0x2e5   : > { %v1380_v18 = vpop.f32.mrf.mxu0 }
 0x2e6   : > { %v908_v19 = vadd.f32 %v1379_v17, %v1333_v15 }
 0x2e7   : > { %v1381_v20 = vpop.f32.mrf.mxu0 }
 0x2e8   : > { %v922_v21 = vmax.f32 %v908_v19, -20.0  ;;  %v1382_v22 = vadd.f32 %v1381_v20, %v1380_v18 }
 0x2e9   : > { %v1383_v23 = vpop.f32.mrf.mxu0 }
 0x2ea   : > { %v926_v24 = vmin.f32 %v922_v21, 2.0  ;;  %v911_v25 = vadd.f32 %v1382_v22, %v1333_v15 }
 0x2eb   : > { %v1384_v28 = vpop.f32.mrf.mxu0 }
 0x2ec   : > { %v930_v29 = vmul.f32 1.442695, %v926_v24  ;;  %v923_v30 = vmax.f32 %v911_v25, -20.0  ;;  %v1385_v31 = vadd.f32 %v1384_v28, %v1383_v23 }
 0x2ed   : > { %v1386_v32 = vpop.f32.mrf.mxu0 }
 0x2ee   : > { %1566 = vpow2.f32 %v930_v29  ;;  %v927_v35 = vmin.f32 %v923_v30, 2.0  ;;  %v916_v36 = vadd.f32 %v1385_v31, %v1333_v15 }
 0x2ef   : > { %v1387_v37 = vpop.f32.mrf.mxu0 }
 0x2f0   : > { %v932_v38 = vmul.f32 1.442695, %v927_v35  ;;  %v924_v39 = vmax.f32 %v916_v36, -20.0  ;;  %v1388_v40 = vadd.f32 %v1387_v37, %v1386_v32 }
 0x2f2   : > { %1568 = vpow2.f32 %v932_v38  ;;  %v928_v41 = vmin.f32 %v924_v39, 2.0  ;;  %v919_v42 = vadd.f32 %v1388_v40, %v1333_v15 }
 0x2f4   : > { %v934_v43 = vmul.f32 1.442695, %v928_v41  ;;  %v925_v44 = vmax.f32 %v919_v42, -20.0 }
 0x2f6   : > { %1570 = vpow2.f32 %v934_v43  ;;  %v929_v45 = vmin.f32 %v925_v44, 2.0 }
 0x2f8   : > { %v936_v47 = vmul.f32 1.442695, %v929_v45 }
 0x2fa   : > { %1572 = vpow2.f32 %v936_v47 }
 0x2fb   : > { %v1567_v48 = vpop.eup %1566 }
 0x2fc   : > { %v954_v49 = vmul.f32 %v1567_v48, %v943_v46 }
 0x2fe   : > { %962 = vrot.lane.b32.xlu0 %v954_v49, %s1788_s16 }
 0x2ff   : > { %v1569_v51 = vpop.eup %1568 }
 0x300   : > { %v955_v53 = vmul.f32 %v1569_v51, %v945_v50 }
 0x302   : > { %964 = vrot.lane.b32.xlu1 %v955_v53, %s1788_s16 }
 0x303   : > { %v1571_v54 = vpop.eup %1570 }
 0x304   : > { %v956_v55 = vmul.f32 %v1571_v54, %v947_v52 }
 0x306   : > { %966 = vrot.lane.b32.xlu0 %v956_v55, %s1788_s16 }
 0x307   : > { %v1573_v57 = vpop.eup %1572 }
 0x308   : > { %v957_v58 = vmul.f32 %v1573_v57, %v949_v56 }
 0x30a   : > { %968 = vrot.lane.b32.xlu1 %v957_v58, %s1788_s16  ;;  %990 = vrot.lane.b32.xlu0 %v926_v24, %s1789_s29 }
 0x30e   : > { %992 = vrot.lane.b32.xlu1 %v927_v35, %s1789_s29  ;;  %994 = vrot.lane.b32.xlu0 %v928_v41, %s1789_s29 }
 0x312   : > { %996 = vrot.lane.b32.xlu1 %v929_v45, %s1789_s29 }
 0x370   : > { %v963_v59 = vpop.permute.xlu0 %962 }
 0x371   : > { %v2021_v60 = vadd.f32 %v963_v59, %v908_v19 }
 0x373   : > { %v1014_v61 = vmul.f32 -2.0, %v2021_v60  ;;  %v1010_v45 = vsub.f32 0.6931472, %v2021_v60 }
 0x374   : > { %v965_v62 = vpop.permute.xlu1 %964 }
 0x375   : > { %v1022_v63 = vand.u32 2147483647, %v1014_v61  ;;  %v2024_v0 = vadd.f32 %v965_v62, %v911_v25  ;;  %v1018_v41 = vmax.f32 %v1014_v61, 0.0 }
 0x377   : > { %v1026_v2 = vsub.f32 0.0, %v1022_v63  ;;  %v1015_v5 = vmul.f32 -2.0, %v2024_v0  ;;  %v1011_v56 = vsub.f32 0.6931472, %v2024_v0 }
 0x378   : > { %v967_v6 = vpop.permute.xlu0 %966 }
 0x379   : > { %v1030_v3 = vmul.f32 1.442695, %v1026_v2  ;;  %v1023_v4 = vand.u32 2147483647, %v1015_v5  ;;  %v2027_v7 = vadd.f32 %v967_v6, %v916_v36  ;;  %v1019_v51 = vmax.f32 %v1015_v5, 0.0 }
 0x37b   : > { %1574 = vpow2.f32 %v1030_v3  ;;  %v1027_v8 = vsub.f32 0.0, %v1023_v4  ;;  %v2030_v9 = vmul.f32 -2.0, %v2027_v7  ;;  %v1012_v4 = vsub.f32 0.6931472, %v2027_v7 }
 0x37c   : > { %v969_v10 = vpop.permute.xlu1 %968 }
 0x37d   : > { %v1032_v11 = vmul.f32 1.442695, %v1027_v8  ;;  %v1024_v12 = vand.u32 2147483647, %v2030_v9  ;;  %v2033_v13 = vadd.f32 %v969_v10, %v919_v42  ;;  %v1020_v63 = vmax.f32 %v2030_v9, 0.0 }
 0x37f   : > { %1576 = vpow2.f32 %v1032_v11  ;;  %v1028_v14 = vsub.f32 0.0, %v1024_v12  ;;  %v2036_v15 = vmul.f32 -2.0, %v2033_v13  ;;  %v1013_v9 = vsub.f32 0.6931472, %v2033_v13 }
 0x381   : > { %v1034_v16 = vmul.f32 1.442695, %v1028_v14  ;;  %v1025_v17 = vand.u32 2147483647, %v2036_v15  ;;  %v1021_v14 = vmax.f32 %v2036_v15, 0.0  ;;  %v993_v15 = vpop.permute.xlu1 %992 }
 0x383   : > { %1578 = vpow2.f32 %v1034_v16  ;;  %v1029_v18 = vsub.f32 0.0, %v1025_v17 }
 0x385   : > { %v1036_v19 = vmul.f32 1.442695, %v1029_v18 }
 0x387   : > { %1580 = vpow2.f32 %v1036_v19 }
 0x388   : > { %v1575_v20 = vpop.eup %1574 }
 0x389   : > { %v1038_v21 = vadd.f32 1.0, %v1575_v20  ;;  %v1041_v25 = vmul.f32 -0.5, %v1575_v20  ;;  %v1044_v35 = vand.u32 2147483647, %v1575_v20 }
 0x38b   : > { %1582 = vlog2.f32 %v1038_v21  ;;  %v1042_v30 = vadd.f32 1.0, %v1041_v25  ;;  %vm1045_vm0 = vcmp.lt.f32.partialorder %v1044_v35, 0.0004427343  ;;  %v979_v25 = vmul.f32 -0.5, %v1994_v27 }
 0x38c   : > { %v1577_v22 = vpop.eup %1576 }
 0x38d   : > { %v1047_v23 = vadd.f32 1.0, %v1577_v22  ;;  %v1050_v31 = vmul.f32 -0.5, %v1577_v22  ;;  %v1043_v38 = vmul.f32 %v1575_v20, %v1042_v30  ;;  %v1053_v42 = vand.u32 2147483647, %v1577_v22 }
 0x38e   : > { %v980_v30 = vmul.f32 -0.5, %v1999_v33 }
 0x38f   : > { %1584 = vlog2.f32 %v1047_v23  ;;  %v1051_v39 = vadd.f32 1.0, %v1050_v31  ;;  %vm1054_vm1 = vcmp.lt.f32.partialorder %v1053_v42, 0.0004427343  ;;  %v991_v23 = vpop.permute.xlu0 %990 }
 0x390   : > { %v1579_v24 = vpop.eup %1578 }
 0x391   : > { %v1056_v28 = vadd.f32 1.0, %v1579_v24  ;;  %v1059_v40 = vmul.f32 -0.5, %v1579_v24  ;;  %v1052_v48 = vmul.f32 %v1577_v22, %v1051_v39  ;;  %v1062_v53 = vand.u32 2147483647, %v1579_v24 }
 0x392   : > { %v978_v22 = vmul.f32 -0.5, %v1991_v26 }
 0x393   : > { %1586 = vlog2.f32 %v1056_v28  ;;  %v1060_v49 = vadd.f32 1.0, %v1059_v40  ;;  %vm1063_vm2 = vcmp.lt.f32.partialorder %v1062_v53, 0.0004427343  ;;  %v995_v31 = vpop.permute.xlu0 %994 }
 0x394   : > { %v1581_v29 = vpop.eup %1580 }
 0x395   : > { %v1065_v32 = vadd.f32 1.0, %v1581_v29  ;;  %v1068_v50 = vmul.f32 -0.5, %v1581_v29  ;;  %v1061_v61 = vmul.f32 %v1579_v24, %v1060_v49  ;;  %v1071_v6 = vand.u32 2147483647, %v1581_v29 }
 0x396   : > { %v982_v24 = vmul.f32 %v978_v22, %v1991_v26 }
 0x397   : > { %1588 = vlog2.f32 %v1065_v32  ;;  %v1069_v62 = vadd.f32 1.0, %v1068_v50  ;;  %vm1072_vm3 = vcmp.lt.f32.partialorder %v1071_v6, 0.0004427343 }
 0x398   : > { %v1583_v36 = vpop.eup %1582  ;;  %v1002_v28 = vsub.f32 %v982_v24, %v991_v23  ;;  %1590 = vtanh.f32 %v2021_v60 }
 0x399   : > { %v1040_v37 = vmul.f32 0.6931472, %v1583_v36  ;;  %v1070_v12 = vmul.f32 %v1581_v29, %v1069_v62  ;;  %v983_v29 = vmul.f32 %v979_v25, %v1994_v27  ;;  %v984_v36 = vmul.f32 %v980_v30, %v1999_v33 }
 0x39a   : > { %v1350_v32 = vadd.f32 -0.9189385, %v1002_v28  ;;  %1592 = vtanh.f32 %v2024_v0 }
 0x39b   : > { %v1046_v43 = vsel %vm1045_vm0, %v1043_v38, %v1040_v37  ;;  %v1003_v35 = vsub.f32 %v983_v29, %v993_v15  ;;  %v981_v37 = vmul.f32 -0.5, %v2002_v34  ;;  %v997_v38 = vpop.permute.xlu1 %996  ;;  %v1004_v26 = vsub.f32 %v984_v36, %v995_v31 }
 0x39c   : > { %v1585_v44 = vpop.eup %1584  ;;  %v1074_v46 = vadd.f32 %v1046_v43, %v1018_v41  ;;  %1594 = vtanh.f32 %v2027_v7 }
 0x39d   : > { %v1049_v47 = vmul.f32 0.6931472, %v1585_v44  ;;  %v1351_v41 = vadd.f32 -0.9189385, %v1003_v35  ;;  %v985_v42 = vmul.f32 %v981_v37, %v2002_v34  ;;  %v1352_v44 = vadd.f32 -0.9189385, %v1004_v26 }
 0x39e   : > { %v1078_v52 = vsub.f32 %v1010_v45, %v1074_v46  ;;  %1596 = vtanh.f32 %v2033_v13 }
 0x39f   : > { %v1055_v54 = vsel %vm1054_vm1, %v1052_v48, %v1049_v47  ;;  %v1005_v45 = vsub.f32 %v985_v42, %v997_v38 }
 0x3a0   : > { %v1587_v55 = vpop.eup %1586  ;;  %v1082_v57 = vmul.f32 2.0, %v1078_v52  ;;  %v1075_v58 = vadd.f32 %v1055_v54, %v1019_v51 }
 0x3a1   : > { %v1058_v59 = vmul.f32 0.6931472, %v1587_v55  ;;  %v1353_v48 = vadd.f32 -0.9189385, %v1005_v45 }
 0x3a2   : > { %1090 = vrot.lane.b32.xlu0 %v1082_v57, %s1790_s23  ;;  %v1079_v2 = vsub.f32 %v1011_v56, %v1075_v58  ;;  %v1144_v57 = vand.u32 127, %v316_v1 }
 0x3a3   : > { %v1064_v5 = vsel %vm1063_vm2, %v1061_v61, %v1058_v59 }
 0x3a4   : > { %v1589_v3 = vpop.eup %1588  ;;  %v1083_v8 = vmul.f32 2.0, %v1079_v2  ;;  %v1076_v10 = vadd.f32 %v1064_v5, %v1020_v63  ;;  %vm1145_vm5 = vcmp.eq.s32.totalorder %v1144_v57, 8 }
 0x3a5   : > { %v1067_v11 = vmul.f32 0.6931472, %v1589_v3  ;;  %v1591_v58 = vpop.eup %1590 }
 0x3a6   : > { %1092 = vrot.lane.b32.xlu1 %v1083_v8, %s1790_s23  ;;  %v1080_v16 = vsub.f32 %v1012_v4, %v1076_v10  ;;  %v1139_v59 = vsel %vm1122_vm4, %v1591_v58, 0.0 }
 0x3a7   : > { %v1073_v17 = vsel %vm1072_vm3, %v1070_v12, %v1067_v11  ;;  %v1593_v62 = vpop.eup %1592 }
 0x3a8   : > { %v1084_v18 = vmul.f32 2.0, %v1080_v16  ;;  %v1077_v19 = vadd.f32 %v1073_v17, %v1021_v14  ;;  %v1140_v60 = vsel %vm1122_vm4, %v1593_v62, 0.0 }
 0x3a9   : > { %v1595_v7 = vpop.eup %1594 }
 0x3aa   : > { %1094 = vrot.lane.b32.xlu0 %v1084_v18, %s1790_s23  ;;  %v1081_v20 = vsub.f32 %v1013_v9, %v1077_v19  ;;  %v1141_v13 = vsel %vm1122_vm4, %v1595_v7, 0.0 }
 0x3ab   : > { %v1597_v6 = vpop.eup %1596 }
 0x3ac   : > { %v1085_v21 = vmul.f32 2.0, %v1081_v20  ;;  %v1142_v3 = vsel %vm1122_vm4, %v1597_v6, 0.0 }
 0x3ae   : > { %1096 = vrot.lane.b32.xlu1 %v1085_v21, %s1790_s23 }
 0x414   : > { %v1091_v39 = vpop.permute.xlu0 %1090 }
 0x415   : > { %v1102_v40 = vsub.f32 %v1350_v32, %v1091_v39 }
 0x417   : > { %1110 = vrot.lane.b32.xlu0 %v1102_v40, %s1791_s9 }
 0x418   : > { %v1093_v43 = vpop.permute.xlu1 %1092 }
 0x419   : > { %v1103_v27 = vsub.f32 %v1351_v41, %v1093_v43 }
 0x41b   : > { %1112 = vrot.lane.b32.xlu1 %v1103_v27, %s1791_s9 }
 0x41c   : > { %v1095_v46 = vpop.permute.xlu0 %1094 }
 0x41d   : > { %v1104_v47 = vsub.f32 %v1352_v44, %v1095_v46 }
 0x41f   : > { %1114 = vrot.lane.b32.xlu0 %v1104_v47, %s1791_s9 }
 0x420   : > { %v1097_v33 = vpop.permute.xlu1 %1096 }
 0x421   : > { %v1105_v49 = vsub.f32 %v1353_v48, %v1097_v33 }
 0x423   : > { %1116 = vrot.lane.b32.xlu1 %v1105_v49, %s1791_s9 }
 0x489   : > { %v1111_v50 = vpop.permute.xlu0 %1110 }
 0x48a   : > { %v1123_v51 = vsel %vm1122_vm4, %v1111_v50, 0.0 }
 0x48b   : > { %1124 = vadd.xlane.f32.xlu0 %v1123_v51 }
 0x48d   : > { %v1113_v34 = vpop.permute.xlu1 %1112 }
 0x48e   : > { %v1126_v52 = vsel %vm1122_vm4, %v1113_v34, 0.0 }
 0x48f   : > { %1127 = vadd.xlane.f32.xlu1 %v1126_v52 }
 0x491   : > { %v1115_v53 = vpop.permute.xlu0 %1114 }
 0x492   : > { %v1129_v54 = vsel %vm1122_vm4, %v1115_v53, 0.0 }
 0x493   : > { %1130 = vadd.xlane.f32.xlu0 %v1129_v54 }
 0x495   : > { %v1117_v55 = vpop.permute.xlu1 %1116 }
 0x496   : > { %v1132_v56 = vsel %vm1122_vm4, %v1117_v55, 0.0 }
 0x497   : > { %1133 = vadd.xlane.f32.xlu0 %v1132_v56 }
 0x514   : > { %v1125_v61 = vpop.xlane.xlu0 %1124 }
 0x515   : > { %v1146_v63 = vsel %vm1145_vm5, %v1125_v61, %v1139_v59 }
 0x516   : > { %1150 = vst [vmem:[%s286_s7] sm:$0xff] %v1146_v63 }
 0x518   : > { %v1128_v0 = vpop.xlane.xlu1 %1127 }
 0x519   : > { %v1147_v1 = vsel %vm1145_vm5, %v1128_v0, %v1140_v60 }
 0x51a   : > { %1151 = vst [vmem:[%s286_s7 + $0x8] sm:$0xff] %v1147_v1 }
 0x51c   : > { %v1131_v2 = vpop.xlane.xlu0 %1130 }
 0x51d   : > { %v1148_v5 = vsel %vm1145_vm5, %v1131_v2, %v1141_v13 }
 0x51e   : > { %1152 = vst [vmem:[%s286_s7 + $0x10] sm:$0xff] %v1148_v5 }
 0x520   : > { %v1134_v4 = vpop.xlane.xlu0 %1133 }
 0x521   : > { %v1149_v8 = vsel %vm1145_vm5, %v1134_v4, %v1142_v3 }
 0x522   : > { %1153 = vst [vmem:[%s286_s7 + $0x18] sm:$0xff] %v1149_v8 }
 0x523   : > { %1717 = shalt.err (!%p1714_p10)
}
 0x524   : > { %s1718_s15 = scalar_lea.hbm %s2076_s26, 512  ;;  %s1722_s23 = scalar_lea.hbm %s2126_s5, 1024 }
 0x525   : > { %p1719_p6 = scmp.ne.s32.totalorder %s2076_s26, %s1718_s15  ;;  %p1723_p3 = scmp.lt.s32.totalorder %s2076_s26, %s2126_s5 }
 0x526   : > { %p1724_p11 = scmp.lt.s32.totalorder %s1722_s23, %s1718_s15 }
 0x527   : > { %p1720_p4 = pnand %p1719_p6, %p2145_p1 }
 0x528   : > { %p1725_p5 = por %p1724_p11, %p1723_p3 }
 0x529   : > { %p1721_p8 = pneg %p1720_p4 }
 0x52b   : > { %p1726_p7 = pnand %p1725_p5, %p1721_p8 }
 0x52d   : > { %1729 = shalt.err (!%p1726_p7)
}
 0x52e   : > { %s1793_s28 = smov 128   ;;  %s1794_s10 = smov 8  }
 0x52f   : > { %1403 = dma.vmem_to_hbm [thread:$0]  (%p2145_p1), %s2071_s8, 512, %s2076_s26, %s1155_s22, %s1793_s28, %s1793_s28, %s1794_s10  }
 0x530 PF: > { %s1183_s24 = sand.u32 1, %s1764_s18   ;;  %p2146_p12 = scmp.ne.s32.totalorder %s2133_s25, 0 }
 0x531   : > { %p2147_p9 = scmp.ge.s32.totalorder %s1776_s21, 2  ;;  %s1184_s11 = scalar_lea.sflag [#allocation4], %s1183_s24 }
 0x533   : > { %p1420_p13 = pnand %p2147_p9, %p2146_p12 }
 0x535   : > { %p1421_p0 = pneg %p1420_p13 }
 0x537   : > { %1759 = dma.done.wait (%p1421_p0), %s1184_s11, 512  }
 0x538   : > { %1761 = vsyncadd (%p1421_p0), %s1184_s11, 4294966784  ;;  %p20_p2 = scmp.ge.s32.totalorder %s1911_s6, 4   ;;  %s2148_s18 = smov %s1768_s19 }
 0x539   : > { %s2149_s19 = smov %s1772_s20  ;;  %s2150_s20 = smov %s1921_s12 }
 0x53a   : > { %s2151_s21 = smov %s1911_s6  ;;  %22 = sbr.rel (!%p20_p2) target bundleno = 7 (0x7), region = 97 }
 0x53f   :  { %1189 = vsyncpa [#allocation3], 1 }
 0x540   :  { %1191 = vsyncpa [#allocation3 + $0x1], 1 }
 0x541   :  { %1192 = vsyncpa [#allocation6], 1 }
 0x542   :  { %1193 = vsyncpa [#allocation9], 1 }
 0x543   :  { %1194 = vsyncpa [#allocation4], 1 }
 0x544   :  { %1196 = vsyncpa [#allocation4 + $0x1], 1 }

// kernel: tpu_custom_call.1
= control target key start
LH: loop header
LB: loop body
LE: loop exit
PB: predicated region body
PF: predicated region fallthrough
CT: control target
= control target key end

     0   :  { %10 = vsyncpa [#allocation3], 0  ;;  %s2121_s0 = inlined_call_operand.hbm [shape: f32[64,128], index: 0, kind: input, shape index: {}]   ;;  %s2122_s1 = inlined_call_operand.hbm [shape: bf16[128,256], index: 1, kind: input, shape index: {}]   ;;  %s2123_s2 = inlined_call_operand.hbm [shape: bf16[256,256], index: 2, kind: input, shape index: {}]   ;;  %s2124_s3 = inlined_call_operand.hbm [shape: bf16[256,128], index: 3, kind: input, shape index: {}]   ;;  %s2125_s4 = inlined_call_operand.vmem [shape: f32[1,640], index: 4, kind: input, shape index: {}]   ;;  %s2126_s5 = inlined_call_operand.hbm [shape: f32[64,128], index: 5, kind: output, shape index: {}]  }
   0x1   :  { %12 = vsyncpa [#allocation3 + $0x1], 0 }
   0x2   :  { %13 = vsyncpa [#allocation6], 0 }
   0x3   :  { %14 = vsyncpa [#allocation9], 0 }
   0x4   :  { %15 = vsyncpa [#allocation4], 0 }
   0x5   :  { %17 = vsyncpa [#allocation4 + $0x1], 0  ;;  %s1825_s18 = smov 0   ;;  %s1827_s19 = smov 0  }
   0x6   :  { %s1829_s20 = smov 0   ;;  %s1831_s21 = smov 0  }
   0x7 LB: > { %s1846_s22 = sadd.s32 4294967295, %s1776_s21   ;;  %s1270_s23 = sadd.s32 4294967294, %s1776_s21   ;;  %s1776_s21 = sphi %s1831_s21, %s2151_s21   ;;  %s1772_s20 = sphi %s1829_s20, %s2150_s20   ;;  %s1768_s19 = sphi %s1827_s19, %s2149_s19   ;;  %s1764_s18 = sphi %s1825_s18, %s2148_s18  }
   0x8   : > { %p43_p0 = scmp.ne.s32.totalorder %s1768_s19, %s1764_s18  ;;  %p2127_p1 = scmp.eq.s32.totalorder %s1846_s22, 0 }
   0x9   : > { %p151_p2 = scmp.eq.s32.totalorder %s1846_s22, 1  ;;  %p157_p3 = scmp.eq.s32.totalorder %s1270_s23, 1 }
   0xa   : > { %p1855_p4 = por %p2127_p1, %p43_p0  ;;  %p1271_p5 = scmp.ge.s32.totalorder %s1776_s21, 1 }
   0xb   : > { %p1860_p6 = por %p157_p3, %p43_p0  ;;  %p164_p7 = scmp.lt.s32.totalorder %s1776_s21, 3 }
   0xc   : > { %s2132_s24 = scalar_select %p1855_p4, 1, 0 }
   0xd   : > { %s2133_s25 = scalar_select %p1860_p6, 1, 0 }
   0xe   : > { %p1865_p8 = pnand %p1271_p5, %p164_p7  ;;  %s1778_s27 = smov [#allocation5]  }
   0xf   : > { %s176_s28 = sshll.u32 %s1778_s27, 4  ;;  %s1779_s30 = smov [#allocation7]   ;;  %s177_s28 = int_to_ptr.vmem [resolvable:$true] %s176_s28 }
  0x10   : > { %s2134_s26 = scalar_select %p1865_p8, 1, 0 }
  0x11   : > { %p1405_p9 = pneg %p1865_p8  ;;  %s189_s6 = sshll.u32 %s1779_s30, 4  ;;  %s190_s6 = int_to_ptr.vmem [resolvable:$true] %s189_s6 }
  0x12   : > { %s1780_s7 = smov [#allocation8]   ;;  %s1609_s9 = scalar_lea.vmem %s177_s28, 2048 }
  0x13   : > { %p1874_p11 = pnand %p1405_p9, %p2127_p1  ;;  %s202_s8 = sshll.u32 %s1780_s7, 4  ;;  %s203_s8 = int_to_ptr.vmem [resolvable:$true] %s202_s8 }
  0x14   : > { %p1610_p13 = scmp.ne.s32.totalorder %s177_s28, %s1609_s9  ;;  %p1617_p5 = scmp.lt.s32.totalorder %s177_s28, %s177_s28 }
  0x15   : > { %p1600_p12 = pneg %p1874_p11  ;;  %p1618_p7 = scmp.lt.s32.totalorder %s1609_s9, %s1609_s9 }
  0x17   : > { %p1612_p0 = pnand %p1610_p13, %p1600_p12  ;;  %p1619_p9 = por %p1618_p7, %p1617_p5 }
  0x19   : > { %p1613_p3 = pneg %p1612_p0 }
  0x1b   : > { %p1620_p10 = pnand %p1619_p9, %p1613_p3 }
  0x1d   : > { %1623 = shalt.err (!%p1620_p10)
}
  0x1e   : > { %s2128_s10 = smov 128   ;;  %s1782_s11 = smov 8  }
  0x1f   : > { %1408 = dma.hbm_to_vmem [thread:$0]  (!%p1874_p11), %s2122_s1, 2048, %s177_s28, [#allocation6], %s2128_s10, %s2128_s10, %s1782_s11  }
  0x20   : > { %s1635_s14 = scalar_lea.vmem %s190_s6, 4096  ;;  %p1643_p3 = scmp.lt.s32.totalorder %s190_s6, %s190_s6 }
  0x21   : > { %p1636_p13 = scmp.ne.s32.totalorder %s190_s6, %s1635_s14  ;;  %p1644_p10 = scmp.lt.s32.totalorder %s1635_s14, %s1635_s14 }
  0x23   : > { %p1638_p0 = pnand %p1636_p13, %p1600_p12  ;;  %p1645_p7 = por %p1644_p10, %p1643_p3 }
  0x25   : > { %p1639_p5 = pneg %p1638_p0 }
  0x27   : > { %p1646_p9 = pnand %p1645_p7, %p1639_p5 }
  0x29   : > { %1649 = shalt.err (!%p1646_p9)
}
  0x2a   : > { %1411 = dma.hbm_to_vmem [thread:$0]  (!%p1874_p11), %s2123_s2, 4096, %s190_s6, [#allocation6], %s2128_s10, %s2128_s10, %s1782_s11  }
  0x2b   : > { %s1661_s17 = scalar_lea.vmem %s203_s8, 2048  ;;  %p1669_p3 = scmp.lt.s32.totalorder %s203_s8, %s203_s8 }
  0x2c   : > { %p1662_p1 = scmp.ne.s32.totalorder %s203_s8, %s1661_s17  ;;  %p1670_p5 = scmp.lt.s32.totalorder %s1661_s17, %s1661_s17 }
  0x2e   : > { %p1664_p13 = pnand %p1662_p1, %p1600_p12  ;;  %p1671_p10 = por %p1670_p5, %p1669_p3 }
  0x30   : > { %p1665_p0 = pneg %p1664_p13 }
  0x32   : > { %p1672_p7 = pnand %p1671_p10, %p1665_p0 }
  0x34   : > { %1675 = shalt.err (!%p1672_p7)
}
  0x35   : > { %s1783_s23 = smov 64   ;;  %s1784_s27 = smov 4  }
  0x36   : > { %1414 = dma.hbm_to_vmem [thread:$0]  (!%p1874_p11), %s2124_s3, 2048, %s203_s8, [#allocation9], %s1783_s23, %s1783_s23, %s1784_s27  }
  0x37   : > { %s1911_s6 = sadd.s32 1, %s1776_s21   ;;  %s30_s9 = sadd.s32 1, %s1772_s20 }
  0x38   : > { %s27_s7 = ssub.s32 %s1776_s21, %s1911_s6  ;;  %p37_p12 = scmp.ne.s32.totalorder %s1772_s20, %s1768_s19 }
  0x39   : > { %p28_p1 = scmp.eq.s32.totalorder %s27_s7, 0  ;;  %p38_p9 = scmp.eq.s32.totalorder %s1776_s21, 0 }
  0x3a   : > { %p1426_p13 = scmp.lt.s32.totalorder %s1776_s21, 2  ;;  %p1925_p3 = por %p151_p2, %p37_p12 }
  0x3b   : > { %s1921_s12 = scalar_select %p28_p1, %s1772_s20, %s30_s9  }
  0x3c   : > { %p39_p0 = por %p38_p9, %p37_p12  ;;  %s219_s29 = sand.u32 1, %s1772_s20  }
  0x3d   : > { %s2136_s13 = scalar_select %p1925_p3, 1, 0 }
  0x3e   : > { %s1359_s14 = sshll.u32 %s1776_s21, 9  ;;  %s1276_s8 = sshll.u32 %s219_s29, 5 }
  0x3f   : > { %s1934_s17 = scalar_lea.hbm %s2121_s0, %s1359_s14  ;;  %s223_s23 = scalar_lea.vmem [#allocation2], %s1276_s8 }
  0x40   : > { %s230_s27 = sshll.u32 %s223_s23, 4  ;;  %p1936_p11 = pnand %p1426_p13, %p39_p0  ;;  %s1940_s27 = int_to_ptr.vmem [resolvable:$true] %s230_s27 }
  0x41   : > { %s1942_s30 = scalar_lea.sflag [#allocation3], %s219_s29  ;;  %s1676_s7 = scalar_lea.hbm %s1934_s17, 512 }
  0x42   : > { %p1677_p2 = scmp.ne.s32.totalorder %s1934_s17, %s1676_s7  ;;  %p1678_p5 = pneg %p1936_p11 }
  0x43   : > { %s1681_s8 = scalar_lea.hbm %s2121_s0, 1024  ;;  %p1682_p1 = scmp.lt.s32.totalorder %s1934_s17, %s2121_s0 }
  0x44   : > { %p1679_p10 = pnand %p1678_p5, %p1677_p2  ;;  %p1683_p12 = scmp.lt.s32.totalorder %s1681_s8, %s1676_s7 }
  0x46   : > { %p1680_p7 = pneg %p1679_p10  ;;  %p1684_p9 = por %p1683_p12, %p1682_p1 }
  0x48   : > { %p1685_p13 = pnand %p1684_p9, %p1680_p7 }
  0x4a   : > { %1688 = shalt.err (!%p1685_p13)
}
  0x4b   : > { %s1689_s29 = scalar_lea.vmem %s1940_s27, 512  ;;  %s1785_s23 = smov [#allocation2]  }
  0x4c   : > { %p1690_p0 = scmp.ne.s32.totalorder %s1940_s27, %s1689_s29  ;;  %s1694_s10 = sshll.u32 %s1785_s23, 4  ;;  %s1695_s10 = int_to_ptr.vmem [resolvable:$false] %s1694_s10 }
  0x4d   : > { %s1696_s9 = scalar_lea.vmem %s1695_s10, 1024  ;;  %p1697_p10 = scmp.lt.s32.totalorder %s1940_s27, %s1695_s10 }
  0x4e   : > { %p1692_p6 = pnand %p1690_p0, %p1678_p5  ;;  %p1698_p3 = scmp.lt.s32.totalorder %s1696_s9, %s1689_s29 }
  0x50   : > { %p1693_p2 = pneg %p1692_p6  ;;  %p1699_p4 = por %p1698_p3, %p1697_p10 }
  0x52   : > { %p1700_p8 = pnand %p1699_p4, %p1693_p2 }
  0x54   : > { %1703 = shalt.err (!%p1700_p8)
}
  0x55   : > { %s2138_s7 = smov 128   ;;  %p2139_p6 = scmp.ne.s32.totalorder %s2134_s26, 0 }
  0x56   : > { %1418 = dma.hbm_to_vmem [thread:$0]  (!%p1936_p11), %s1934_s17, 512, %s1940_s27, %s1942_s30, %s2138_s7, %s2138_s7, %s1782_s11  }
  0x57   : > { %242 = sbr.rel (%p2139_p6) target bundleno = 1328 (0x530), region = 40  ;;  %s1969_s14 = sand.u32 (!%p2139_p6), 1, %s1768_s19  }
  0x58   : > { %s1280_s10 = sshll.u32 (!%p2139_p6), %s1969_s14, 5  ;;  %s245_s8 = scalar_lea.sflag (!%p2139_p6), [#allocation3], %s1969_s14 }
  0x59   : > { %s1975_s28 = scalar_lea.vmem (!%p2139_p6), [#allocation2], %s1280_s10  ;;  %p2140_p4 = scmp.ne.s32.totalorder (!%p2139_p6), %s2132_s24, 0 }
  0x5c   : > { %1747 = dma.done.wait (%p2140_p4), %s245_s8, 512  }
  0x5d   : > { %1749 = vsyncadd (%p2140_p4), %s245_s8, 4294966784  ;;  %p2141_p8 = scmp.eq.s32.totalorder %s1846_s22, 0 }
  0x5f   : > { %1751 = dma.done.wait (%p2141_p8), [#allocation6], 6144   ;;  %p2142_p3 = pmov %p2141_p8 }
  0x61   : > { %1753 = vsyncadd (%p2142_p3), [#allocation6], 4294961152  ;;  %p2143_p11 = pmov %p2142_p3 }
  0x62   : > { %p2144_p5 = pmov %p2142_p3 }
  0x63   : > { %1755 = dma.done.wait (%p2143_p11), [#allocation9], 2048  }
  0x64   : > { %1757 = vsyncadd (%p2144_p5), [#allocation9], 4294965248  ;;  %v1786_v0 = vmov 0   ;;  %v1478_v1 = vld [vmem:[#allocation5 + $0x74] ss:$8 sps:$4 sm:$0xff]   ;;  %v1991_v26 = vld [vmem:[%s1975_s28] sm:$0xff] }
  0x65   : > { %438 = vmatprep.mubr.bf16.mxu0 %v1786_v0  ;;  %v1480_v2 = vld [vmem:[#allocation5 + $0x70] ss:$8 sps:$4 sm:$0xff]   ;;  %406 = vmatprep.subr.bf16.mxu0 %v1478_v1  ;;  %v1481_v3 = vld [vmem:[#allocation5 + $0x64] ss:$8 sps:$4 sm:$0xff]   ;;  %v1483_v4 = vld [vmem:[#allocation5 + $0x60] ss:$8 sps:$4 sm:$0xff]   ;;  %v316_v1 = vlaneseq }
  0x66   : > { %407 = vmatpush1.bf16.msra.mxu0 %v1480_v2  ;;  %v1484_v5 = vld [vmem:[#allocation5 + $0x54] ss:$8 sps:$4 sm:$0xff]   ;;  %v1486_v6 = vld [vmem:[#allocation5 + $0x50] ss:$8 sps:$4 sm:$0xff]   ;;  %v1487_v7 = vld [vmem:[#allocation5 + $0x44] ss:$8 sps:$4 sm:$0xff]  }
  0x67   : > { %408 = vmatprep.subr.bf16.mxu0 %v1481_v3  ;;  %v1489_v8 = vld [vmem:[#allocation5 + $0x40] ss:$8 sps:$4 sm:$0xff]   ;;  %v1490_v9 = vld [vmem:[#allocation5 + $0x34] ss:$8 sps:$4 sm:$0xff]   ;;  %v1504_v11 = vld [vmem:[#allocation7 + $0x70] ss:$8 sps:$4 sm:$0xff]  }
  0x68   : > { %v1502_v10 = vld [vmem:[#allocation7 + $0x74] ss:$8 sps:$4 sm:$0xff]   ;;  %v1492_v12 = vld [vmem:[#allocation5 + $0x30] ss:$8 sps:$4 sm:$0xff]   ;;  %v1505_v13 = vld [vmem:[#allocation7 + $0x64] ss:$8 sps:$4 sm:$0xff]  }
  0x69   : > { %674 = vmatprep.subr.bf16.mxu1 %v1502_v10  ;;  %v1493_v14 = vld [vmem:[#allocation5 + $0x24] ss:$8 sps:$4 sm:$0xff]   ;;  %v1507_v15 = vld [vmem:[#allocation7 + $0x60] ss:$8 sps:$4 sm:$0xff]   ;;  %v1508_v16 = vld [vmem:[#allocation7 + $0x54] ss:$8 sps:$4 sm:$0xff]  }
  0x6a   : > { %409 = vmatpush1.bf16.msra.mxu0 %v1483_v4  ;;  %675 = vmatpush1.bf16.msra.mxu1 %v1504_v11  ;;  %v1495_v17 = vld [vmem:[#allocation5 + $0x20] ss:$8 sps:$4 sm:$0xff]   ;;  %v1496_v18 = vld [vmem:[#allocation5 + $0x14] ss:$8 sps:$4 sm:$0xff]   ;;  %v1510_v19 = vld [vmem:[#allocation7 + $0x50] ss:$8 sps:$4 sm:$0xff]  }
  0x6b   : > { %410 = vmatprep.subr.bf16.mxu0 %v1484_v5  ;;  %676 = vmatprep.subr.bf16.mxu1 %v1505_v13  ;;  %v1511_v20 = vld [vmem:[#allocation7 + $0x44] ss:$8 sps:$4 sm:$0xff]   ;;  %v1498_v21 = vld [vmem:[#allocation5 + $0x10] ss:$8 sps:$4 sm:$0xff]   ;;  %v1513_v23 = vld [vmem:[#allocation7 + $0x40] ss:$8 sps:$4 sm:$0xff]  }
  0x6c   : > { %v1499_v22 = vld [vmem:[#allocation5 + $0x4] ss:$8 sps:$4 sm:$0xff]   ;;  %v1514_v24 = vld [vmem:[#allocation7 + $0x34] ss:$8 sps:$4 sm:$0xff]   ;;  %v1501_v25 = vld [vmem:[#allocation5] ss:$8 sps:$4 sm:$0xff]  }
  0x6d   : > { %v1994_v27 = vld [vmem:[%s1975_s28 + $0x8] sm:$0xff]  ;;  %v1516_v28 = vld [vmem:[#allocation7 + $0x30] ss:$8 sps:$4 sm:$0xff]   ;;  %v1520_v32 = vld [vmem:[#allocation7 + $0x14] ss:$8 sps:$4 sm:$0xff]   ;;  %v317_v2 = vshrl.u32 %v316_v1, 7 }
  0x6e   : > { %411 = vmatpush1.bf16.msra.mxu0 %v1486_v6  ;;  %677 = vmatpush1.bf16.msra.mxu1 %v1507_v15  ;;  %v1517_v29 = vld [vmem:[#allocation7 + $0x24] ss:$8 sps:$4 sm:$0xff]   ;;  %v1519_v30 = vld [vmem:[#allocation7 + $0x20] ss:$8 sps:$4 sm:$0xff]   ;;  %v297_v31 = vpack.c.bf16 %v1994_v27, %v1991_v26  ;;  %v1999_v33 = vld [vmem:[%s1975_s28 + $0x10] sm:$0xff]  ;;  %s1787_s11 = smov 104  }
  0x6f   : > { %412 = vmatprep.subr.bf16.mxu0 %v1487_v7  ;;  %678 = vmatprep.subr.bf16.mxu1 %v1508_v16  ;;  %v2002_v34 = vld [vmem:[%s1975_s28 + $0x18] sm:$0xff]  ;;  %v1523_v36 = vld [vmem:[#allocation7 + $0x4] ss:$8 sps:$4 sm:$0xff]   ;;  %v1525_v37 = vld [vmem:[#allocation7] ss:$8 sps:$4 sm:$0xff]   ;;  %v322_v3 = vsub.s32 1, %v317_v2 }
  0x70   : > { %v1522_v35 = vld [vmem:[#allocation7 + $0x10] ss:$8 sps:$4 sm:$0xff]   ;;  %v298_v38 = vpack.c.bf16 %v2002_v34, %v1999_v33  ;;  %v1526_v39 = vld [vmem:[#allocation7 + $0xf4] ss:$8 sps:$4 sm:$0xff]   ;;  %v1529_v41 = vld [vmem:[#allocation7 + $0xe4] ss:$8 sps:$4 sm:$0xff]   ;;  %942 = vrot.lane.b32.xlu0 %v1991_v26, %s1787_s11  ;;  %946 = vrot.lane.b32.xlu1 %v1999_v33, %s1787_s11 }
  0x71   : > { %v1528_v40 = vld [vmem:[#allocation7 + $0xf0] ss:$8 sps:$4 sm:$0xff]   ;;  %v1531_v42 = vld [vmem:[#allocation7 + $0xe0] ss:$8 sps:$4 sm:$0xff]   ;;  %v1532_v43 = vld [vmem:[#allocation7 + $0xd4] ss:$8 sps:$4 sm:$0xff]  }
  0x72   : > { %413 = vmatpush1.bf16.msra.mxu0 %v1489_v8  ;;  %679 = vmatpush1.bf16.msra.mxu1 %v1510_v19  ;;  %v1534_v44 = vld [vmem:[#allocation7 + $0xd0] ss:$8 sps:$4 sm:$0xff]   ;;  %v1535_v45 = vld [vmem:[#allocation7 + $0xc4] ss:$8 sps:$4 sm:$0xff]   ;;  %v1537_v46 = vld [vmem:[#allocation7 + $0xc0] ss:$8 sps:$4 sm:$0xff]  }
  0x73   : > { %414 = vmatprep.subr.bf16.mxu0 %v1490_v9  ;;  %680 = vmatprep.subr.bf16.mxu1 %v1511_v20  ;;  %v1538_v47 = vld [vmem:[#allocation7 + $0xb4] ss:$8 sps:$4 sm:$0xff]   ;;  %v1540_v48 = vld [vmem:[#allocation7 + $0xb0] ss:$8 sps:$4 sm:$0xff]   ;;  %v1541_v49 = vld [vmem:[#allocation7 + $0xa4] ss:$8 sps:$4 sm:$0xff]  }
  0x74   : > { %v1543_v50 = vld [vmem:[#allocation7 + $0xa0] ss:$8 sps:$4 sm:$0xff]   ;;  %v1544_v51 = vld [vmem:[#allocation7 + $0x94] ss:$8 sps:$4 sm:$0xff]   ;;  %v1546_v52 = vld [vmem:[#allocation7 + $0x90] ss:$8 sps:$4 sm:$0xff]   ;;  %944 = vrot.lane.b32.xlu0 %v1994_v27, %s1787_s11  ;;  %948 = vrot.lane.b32.xlu1 %v2002_v34, %s1787_s11 }
  0x75   : > { %v1547_v53 = vld [vmem:[#allocation7 + $0x84] ss:$8 sps:$4 sm:$0xff]   ;;  %v1549_v54 = vld [vmem:[#allocation7 + $0x80] ss:$8 sps:$4 sm:$0xff]   ;;  %v1550_v55 = vld [vmem:[#allocation8 + $0x78] sm:$0xff]   ;;  %v318_v4 = vsub.s32 0, %v317_v2 }
  0x76   : > { %415 = vmatpush1.bf16.msra.mxu0 %v1492_v12  ;;  %681 = vmatpush1.bf16.msra.mxu1 %v1513_v23  ;;  %v1551_v56 = vld [vmem:[#allocation8 + $0x38] sm:$0xff]   ;;  %v1552_v57 = vld [vmem:[#allocation8 + $0x70] sm:$0xff]   ;;  %v1554_v59 = vld [vmem:[#allocation8 + $0x68] sm:$0xff]   ;;  %s1788_s16 = smov 120   ;;  %s1789_s29 = smov 24   ;;  %vm1122_vm4 = vcmask 64512  }
  0x77   : > { %416 = vmatprep.subr.bf16.mxu0 %v1493_v14  ;;  %682 = vmatprep.subr.bf16.mxu1 %v1514_v24  ;;  %v1553_v58 = vld [vmem:[#allocation8 + $0x30] sm:$0xff]   ;;  %v1555_v60 = vld [vmem:[#allocation8 + $0x28] sm:$0xff]   ;;  %v1556_v61 = vld [vmem:[#allocation8 + $0x60] sm:$0xff]   ;;  %s1790_s23 = smov 32   ;;  %s1791_s9 = smov 96  }
  0x78   : > { %v1557_v62 = vld [vmem:[#allocation8 + $0x20] sm:$0xff]   ;;  %v1558_v63 = vld [vmem:[#allocation8 + $0x58] sm:$0xff]   ;;  %s286_s7 = scalar_lea.vmem [#allocation10], %s1280_s10  ;;  %s1360_s28 = sshll.u32 %s1846_s22, 9 }
  0x79   : > { %v290_v5 = vld [vmem:[%s2125_s4] sm:$0x3]  ;;  %s1168_s8 = sshll.u32 %s286_s7, 4  ;;  %s2076_s26 = scalar_lea.hbm %s2126_s5, %s1360_s28  ;;  %s2071_s8 = int_to_ptr.vmem [resolvable:$true] %s1168_s8 }
  0x7a   : > { %417 = vmatpush1.bf16.msra.mxu0 %v1495_v17  ;;  %683 = vmatpush1.bf16.msra.mxu1 %v1516_v28  ;;  %v323_v7 = vrot.slane %v290_v5, %v322_v3  ;;  %v319_v8 = vrot.slane %v290_v5, %v318_v4  ;;  %s1155_s22 = scalar_lea.sflag [#allocation4], %s1969_s14  ;;  %s1704_s11 = scalar_lea.vmem %s2071_s8, 512 }
  0x7b   : > { %418 = vmatprep.subr.bf16.mxu0 %v1496_v18  ;;  %684 = vmatprep.subr.bf16.mxu1 %v1517_v29  ;;  %p1705_p7 = scmp.ne.s32.totalorder %s2071_s8, %s1704_s11  ;;  %p2145_p1 = scmp.ne.s32.totalorder %s2136_s13, 0 }
  0x7c   : > { %s1792_s17 = smov [#allocation10]  }
  0x7d   : > { %p1706_p12 = pnand %p1705_p7, %p2145_p1  ;;  %s1708_s27 = sshll.u32 %s1792_s17, 4  ;;  %s1709_s27 = int_to_ptr.vmem [resolvable:$false] %s1708_s27 }
  0x7e   : > { %419 = vmatpush1.bf16.msra.mxu0 %v1498_v21  ;;  %685 = vmatpush1.bf16.msra.mxu1 %v1519_v30  ;;  %s1710_s30 = scalar_lea.vmem %s1709_s27, 1024  ;;  %p1711_p13 = scmp.lt.s32.totalorder %s2071_s8, %s1709_s27 }
  0x7f   : > { %420 = vmatprep.subr.bf16.mxu0 %v1499_v22  ;;  %686 = vmatprep.subr.bf16.mxu1 %v1520_v32  ;;  %p1707_p9 = pneg %p1706_p12  ;;  %p1712_p0 = scmp.lt.s32.totalorder %s1710_s30, %s1704_s11 }
  0x81   : > { %p1713_p2 = por %p1712_p0, %p1711_p13 }
  0x82   : > { %421 = vmatpush1.bf16.msra.mxu0 %v1501_v25  ;;  %687 = vmatpush1.bf16.msra.mxu1 %v1522_v35 }
  0x83   : > { %688 = vmatprep.subr.bf16.mxu1 %v1523_v36  ;;  %1361 = vmatprep.subr.bf16.mxu0 %v1550_v55  ;;  %p1714_p10 = pnand %p1713_p2, %p1707_p9 }
  0x85   : > { %439 = vmatmul.mubr.bf16.vlgmr.msra.gmra.mxu0 %v297_v31 }
  0x86   : > { %448 = vmatprep.mubr.bf16.mxu0 %v1786_v0  ;;  %689 = vmatpush1.bf16.msra.mxu1 %v1525_v37  ;;  %v1559_v0 = vld [vmem:[#allocation8 + $0x18] sm:$0xff]  }
  0x87   : > { %690 = vmatprep.subr.bf16.mxu1 %v1526_v39  ;;  %1362 = vmatpush3.bf16.msra.mxu0 %v1551_v56 }
  0x88   : > { %1363 = vmatprep.subr.bf16.mxu0 %v1552_v57 }
  0x8a   : > { %691 = vmatpush2.bf16.msra.mxu1 %v1528_v40  ;;  %v1560_v40 = vld [vmem:[#allocation8 + $0x50] sm:$0xff]  }
  0x8b   : > { %692 = vmatprep.subr.bf16.mxu1 %v1529_v41  ;;  %1364 = vmatpush3.bf16.msra.mxu0 %v1553_v58  ;;  %v1561_v41 = vld [vmem:[#allocation8 + $0x10] sm:$0xff]  }
  0x8c   : > { %1365 = vmatprep.subr.bf16.mxu0 %v1554_v59 }
  0x8d   : > { %449 = vmatmul.mubr.bf16.gmra.mxu0 %v298_v38 }
  0x8e   : > { %693 = vmatpush2.bf16.msra.mxu1 %v1531_v42  ;;  %v1562_v42 = vld [vmem:[#allocation8 + $0x48] sm:$0xff]  }
  0x8f   : > { %694 = vmatprep.subr.bf16.mxu1 %v1532_v43  ;;  %1366 = vmatpush3.bf16.msra.mxu0 %v1555_v60  ;;  %v1563_v43 = vld [vmem:[#allocation8 + $0x8] sm:$0xff]  }
  0x90   : > { %1367 = vmatprep.subr.bf16.mxu0 %v1556_v61 }
  0x92   : > { %695 = vmatpush2.bf16.msra.mxu1 %v1534_v44  ;;  %v1564_v44 = vld [vmem:[#allocation8 + $0x40] sm:$0xff]  }
  0x93   : > { %696 = vmatprep.subr.bf16.mxu1 %v1535_v45  ;;  %1368 = vmatpush3.bf16.msra.mxu0 %v1557_v62  ;;  %v1565_v45 = vld [vmem:[#allocation8] sm:$0xff]  }
  0x94   : > { %1369 = vmatprep.subr.bf16.mxu0 %v1558_v63 }
  0x96   : > { %697 = vmatpush2.bf16.msra.mxu1 %v1537_v46  ;;  %v291_v46 = vld [vmem:[%s2125_s4 + $0x2] sm:$0x3] }
  0x97   : > { %698 = vmatprep.subr.bf16.mxu1 %v1538_v47  ;;  %1370 = vmatpush3.bf16.msra.mxu0 %v1559_v0 }
  0x98   : > { %1371 = vmatprep.subr.bf16.mxu0 %v1560_v40 }
  0x9a   : > { %699 = vmatpush2.bf16.msra.mxu1 %v1540_v48  ;;  %v511_v48 = vrot.slane %v291_v46, %v322_v3 }
  0x9b   : > { %700 = vmatprep.subr.bf16.mxu1 %v1541_v49  ;;  %1372 = vmatpush3.bf16.msra.mxu0 %v1561_v41  ;;  %v507_v49 = vrot.slane %v291_v46, %v318_v4 }
  0x9c   : > { %1373 = vmatprep.subr.bf16.mxu0 %v1562_v42 }
  0x9e   : > { %701 = vmatpush2.bf16.msra.mxu1 %v1543_v50 }
  0x9f   : > { %702 = vmatprep.subr.bf16.mxu1 %v1544_v51  ;;  %1374 = vmatpush3.bf16.msra.mxu0 %v1563_v43 }
  0xa0   : > { %1375 = vmatprep.subr.bf16.mxu0 %v1564_v44 }
  0xa2   : > { %703 = vmatpush2.bf16.msra.mxu1 %v1546_v52 }
  0xa3   : > { %704 = vmatprep.subr.bf16.mxu1 %v1547_v53  ;;  %1376 = vmatpush3.bf16.msra.mxu0 %v1565_v45 }
  0xa6   : > { %705 = vmatpush2.bf16.msra.mxu1 %v1549_v54 }
  0xe2   : > { %v943_v46 = vpop.permute.xlu0 %942 }
 0x145   : > { %v440_v6 = vpop.f32.mrf.mxu0 }
 0x146   : > { %v441_v13 = vadd.f32 %v440_v6, %v319_v8 }
 0x147   : > { %v442_v9 = vpop.f32.mrf.mxu0 }
 0x148   : > { %v443_v11 = vadd.f32 %v442_v9, %v323_v7  ;;  %v459_v20 = vmax.f32 %v441_v13, 0.0 }
 0x149   : > { %v444_v10 = vpop.f32.mrf.mxu0 }
 0x14a   : > { %v445_v12 = vadd.f32 %v444_v10, %v319_v8  ;;  %v460_v18 = vmax.f32 %v443_v11, 0.0 }
 0x14b   : > { %v446_v14 = vpop.f32.mrf.mxu0 }
 0x14c   : > { %v447_v15 = vadd.f32 %v446_v14, %v323_v7  ;;  %v461_v16 = vmax.f32 %v445_v12, 0.0 }
 0x14d   : > { %v450_v17 = vpop.f32.mrf.mxu0 }
 0x14e   : > { %v462_v19 = vmax.f32 %v447_v15, 0.0  ;;  %v467_v23 = vpack.c.bf16 %v461_v16, %v459_v20  ;;  %v451_v29 = vadd.f32 %v450_v17, %v319_v8  ;;  %v1333_v15 = vld [vmem:[%s2125_s4 + $0x4] ss:$0 sm:$0xff] }
 0x14f   : > { %v452_v21 = vpop.f32.mrf.mxu0 }
 0x150   : > { %v468_v22 = vpack.c.bf16 %v462_v19, %v460_v18  ;;  %v453_v25 = vadd.f32 %v452_v21, %v323_v7  ;;  %v463_v37 = vmax.f32 %v451_v29, 0.0 }
 0x151   : > { %v454_v24 = vpop.f32.mrf.mxu0 }
 0x152   : > { %v455_v28 = vadd.f32 %v454_v24, %v319_v8  ;;  %706 = vmatprep.mubr.bf16.mxu1 %v468_v22  ;;  %v464_v35 = vmax.f32 %v453_v25, 0.0 }
 0x153   : > { %v456_v30 = vpop.f32.mrf.mxu0  ;;  %707 = vmatmul.mubr.bf16.vlgmr.msra.gmra.mxu1 %v467_v23 }
 0x154   : > { %v457_v31 = vadd.f32 %v456_v30, %v323_v7  ;;  %v465_v32 = vmax.f32 %v455_v28, 0.0 }
 0x156   : > { %v466_v36 = vmax.f32 %v457_v31, 0.0  ;;  %v469_v39 = vpack.c.bf16 %v465_v32, %v463_v37 }
 0x158   : > { %v470_v38 = vpack.c.bf16 %v466_v36, %v464_v35 }
 0x15a   : > { %716 = vmatprep.mubr.bf16.mxu1 %v470_v38 }
 0x15b   : > { %717 = vmatmul.mubr.bf16.gmra.mxu1 %v469_v39 }
 0x213   : > { %v708_v47 = vpop.f32.mrf.mxu1 }
 0x214   : > { %v709_v54 = vadd.f32 %v708_v47, %v507_v49 }
 0x215   : > { %v710_v50 = vpop.f32.mrf.mxu1 }
 0x216   : > { %v711_v52 = vadd.f32 %v710_v50, %v511_v48  ;;  %v727_v61 = vmax.f32 %v709_v54, 0.0  ;;  %v945_v50 = vpop.permute.xlu0 %944 }
 0x217   : > { %v712_v51 = vpop.f32.mrf.mxu1 }
 0x218   : > { %v713_v53 = vadd.f32 %v712_v51, %v507_v49  ;;  %v728_v59 = vmax.f32 %v711_v52, 0.0  ;;  %v947_v52 = vpop.permute.xlu1 %946 }
 0x219   : > { %v714_v55 = vpop.f32.mrf.mxu1 }
 0x21a   : > { %v715_v56 = vadd.f32 %v714_v55, %v511_v48  ;;  %v729_v57 = vmax.f32 %v713_v53, 0.0 }
 0x21b   : > { %v718_v58 = vpop.f32.mrf.mxu1 }
 0x21c   : > { %v730_v60 = vmax.f32 %v715_v56, 0.0  ;;  %v735_v0 = vpack.c.bf16 %v729_v57, %v727_v61  ;;  %v719_v3 = vadd.f32 %v718_v58, %v507_v49  ;;  %v949_v56 = vpop.permute.xlu1 %948 }
 0x21d   : > { %v720_v62 = vpop.f32.mrf.mxu1 }
 0x21e   : > { %v736_v63 = vpack.c.bf16 %v730_v60, %v728_v59  ;;  %v721_v5 = vadd.f32 %v720_v62, %v511_v48  ;;  %v731_v11 = vmax.f32 %v719_v3, 0.0 }
 0x21f   : > { %v722_v2 = vpop.f32.mrf.mxu1 }
 0x220   : > { %v723_v6 = vadd.f32 %v722_v2, %v507_v49  ;;  %905 = vmatprep.mubr.bf16.mxu0 %v736_v63  ;;  %v732_v9 = vmax.f32 %v721_v5, 0.0 }
 0x221   : > { %v724_v4 = vpop.f32.mrf.mxu1  ;;  %906 = vmatmul.mubr.bf16.vlgmr.msra.gmra.mxu0 %v735_v0 }
 0x222   : > { %v725_v7 = vadd.f32 %v724_v4, %v511_v48  ;;  %v733_v8 = vmax.f32 %v723_v6, 0.0 }
 0x224   : > { %v734_v10 = vmax.f32 %v725_v7, 0.0  ;;  %v737_v13 = vpack.c.bf16 %v733_v8, %v731_v11 }
 0x226   : > { %v738_v12 = vpack.c.bf16 %v734_v10, %v732_v9 }
 0x228   : > { %913 = vmatprep.mubr.bf16.mxu0 %v738_v12 }
 0x229   : > { %914 = vmatmul.mubr.bf16.gmra.mxu0 %v737_v13 }
 0x2e1   : > { %v1377_v14 = vpop.f32.mrf.mxu0 }
 0x2e3   : > { %v1378_v16 = vpop.f32.mrf.mxu0 }
 0x2e4   : > { %v1379_v17 = vadd.f32 %v1378_v16, %v1377_v14 }
 0x2e5   : > { %v1380_v18 = vpop.f32.mrf.mxu0 }
 0x2e6   : > { %v908_v19 = vadd.f32 %v1379_v17, %v1333_v15 }
 0x2e7   : > { %v1381_v20 = vpop.f32.mrf.mxu0 }
 0x2e8   : > { %v922_v21 = vmax.f32 %v908_v19, -20.0  ;;  %v1382_v22 = vadd.f32 %v1381_v20, %v1380_v18 }
 0x2e9   : > { %v1383_v23 = vpop.f32.mrf.mxu0 }
 0x2ea   : > { %v926_v24 = vmin.f32 %v922_v21, 2.0  ;;  %v911_v25 = vadd.f32 %v1382_v22, %v1333_v15 }
 0x2eb   : > { %v1384_v28 = vpop.f32.mrf.mxu0 }
 0x2ec   : > { %v930_v29 = vmul.f32 1.442695, %v926_v24  ;;  %v923_v30 = vmax.f32 %v911_v25, -20.0  ;;  %v1385_v31 = vadd.f32 %v1384_v28, %v1383_v23 }
 0x2ed   : > { %v1386_v32 = vpop.f32.mrf.mxu0 }
 0x2ee   : > { %1566 = vpow2.f32 %v930_v29  ;;  %v927_v35 = vmin.f32 %v923_v30, 2.0  ;;  %v916_v36 = vadd.f32 %v1385_v31, %v1333_v15 }
 0x2ef   : > { %v1387_v37 = vpop.f32.mrf.mxu0 }
 0x2f0   : > { %v932_v38 = vmul.f32 1.442695, %v927_v35  ;;  %v924_v39 = vmax.f32 %v916_v36, -20.0  ;;  %v1388_v40 = vadd.f32 %v1387_v37, %v1386_v32 }
 0x2f2   : > { %1568 = vpow2.f32 %v932_v38  ;;  %v928_v41 = vmin.f32 %v924_v39, 2.0  ;;  %v919_v42 = vadd.f32 %v1388_v40, %v1333_v15 }
 0x2f4   : > { %v934_v43 = vmul.f32 1.442695, %v928_v41  ;;  %v925_v44 = vmax.f32 %v919_v42, -20.0 }
 0x2f6   : > { %1570 = vpow2.f32 %v934_v43  ;;  %v929_v45 = vmin.f32 %v925_v44, 2.0 }
 0x2f8   : > { %v936_v47 = vmul.f32 1.442695, %v929_v45 }
 0x2fa   : > { %1572 = vpow2.f32 %v936_v47 }
 0x2fb   : > { %v1567_v48 = vpop.eup %1566 }
 0x2fc   : > { %v954_v49 = vmul.f32 %v1567_v48, %v943_v46 }
 0x2fe   : > { %962 = vrot.lane.b32.xlu0 %v954_v49, %s1788_s16 }
 0x2ff   : > { %v1569_v51 = vpop.eup %1568 }
 0x300   : > { %v955_v53 = vmul.f32 %v1569_v51, %v945_v50 }
 0x302   : > { %964 = vrot.lane.b32.xlu1 %v955_v53, %s1788_s16 }
 0x303   : > { %v1571_v54 = vpop.eup %1570 }
 0x304   : > { %v956_v55 = vmul.f32 %v1571_v54, %v947_v52 }
 0x306   : > { %966 = vrot.lane.b32.xlu0 %v956_v55, %s1788_s16 }
 0x307   : > { %v1573_v57 = vpop.eup %1572 }
 0x308   : > { %v957_v58 = vmul.f32 %v1573_v57, %v949_v56 }
 0x30a   : > { %968 = vrot.lane.b32.xlu1 %v957_v58, %s1788_s16  ;;  %990 = vrot.lane.b32.xlu0 %v926_v24, %s1789_s29 }
 0x30e   : > { %992 = vrot.lane.b32.xlu1 %v927_v35, %s1789_s29  ;;  %994 = vrot.lane.b32.xlu0 %v928_v41, %s1789_s29 }
 0x312   : > { %996 = vrot.lane.b32.xlu1 %v929_v45, %s1789_s29 }
 0x370   : > { %v963_v59 = vpop.permute.xlu0 %962 }
 0x371   : > { %v2021_v60 = vadd.f32 %v963_v59, %v908_v19 }
 0x373   : > { %v1014_v61 = vmul.f32 -2.0, %v2021_v60  ;;  %v1010_v45 = vsub.f32 0.6931472, %v2021_v60 }
 0x374   : > { %v965_v62 = vpop.permute.xlu1 %964 }
 0x375   : > { %v1022_v63 = vand.u32 2147483647, %v1014_v61  ;;  %v2024_v0 = vadd.f32 %v965_v62, %v911_v25  ;;  %v1018_v41 = vmax.f32 %v1014_v61, 0.0 }
 0x377   : > { %v1026_v2 = vsub.f32 0.0, %v1022_v63  ;;  %v1015_v5 = vmul.f32 -2.0, %v2024_v0  ;;  %v1011_v56 = vsub.f32 0.6931472, %v2024_v0 }
 0x378   : > { %v967_v6 = vpop.permute.xlu0 %966 }
 0x379   : > { %v1030_v3 = vmul.f32 1.442695, %v1026_v2  ;;  %v1023_v4 = vand.u32 2147483647, %v1015_v5  ;;  %v2027_v7 = vadd.f32 %v967_v6, %v916_v36  ;;  %v1019_v51 = vmax.f32 %v1015_v5, 0.0 }
 0x37b   : > { %1574 = vpow2.f32 %v1030_v3  ;;  %v1027_v8 = vsub.f32 0.0, %v1023_v4  ;;  %v2030_v9 = vmul.f32 -2.0, %v2027_v7  ;;  %v1012_v4 = vsub.f32 0.6931472, %v2027_v7 }
 0x37c   : > { %v969_v10 = vpop.permute.xlu1 %968 }
 0x37d   : > { %v1032_v11 = vmul.f32 1.442695, %v1027_v8  ;;  %v1024_v12 = vand.u32 2147483647, %v2030_v9  ;;  %v2033_v13 = vadd.f32 %v969_v10, %v919_v42  ;;  %v1020_v63 = vmax.f32 %v2030_v9, 0.0 }
 0x37f   : > { %1576 = vpow2.f32 %v1032_v11  ;;  %v1028_v14 = vsub.f32 0.0, %v1024_v12  ;;  %v2036_v15 = vmul.f32 -2.0, %v2033_v13  ;;  %v1013_v9 = vsub.f32 0.6931472, %v2033_v13 }
 0x381   : > { %v1034_v16 = vmul.f32 1.442695, %v1028_v14  ;;  %v1025_v17 = vand.u32 2147483647, %v2036_v15  ;;  %v1021_v14 = vmax.f32 %v2036_v15, 0.0  ;;  %v993_v15 = vpop.permute.xlu1 %992 }
 0x383   : > { %1578 = vpow2.f32 %v1034_v16  ;;  %v1029_v18 = vsub.f32 0.0, %v1025_v17 }
 0x385   : > { %v1036_v19 = vmul.f32 1.442695, %v1029_v18 }
 0x387   : > { %1580 = vpow2.f32 %v1036_v19 }
 0x388   : > { %v1575_v20 = vpop.eup %1574 }
 0x389   : > { %v1038_v21 = vadd.f32 1.0, %v1575_v20  ;;  %v1041_v25 = vmul.f32 -0.5, %v1575_v20  ;;  %v1044_v35 = vand.u32 2147483647, %v1575_v20 }
 0x38b   : > { %1582 = vlog2.f32 %v1038_v21  ;;  %v1042_v30 = vadd.f32 1.0, %v1041_v25  ;;  %vm1045_vm0 = vcmp.lt.f32.partialorder %v1044_v35, 0.0004427343  ;;  %v979_v25 = vmul.f32 -0.5, %v1994_v27 }
 0x38c   : > { %v1577_v22 = vpop.eup %1576 }
 0x38d   : > { %v1047_v23 = vadd.f32 1.0, %v1577_v22  ;;  %v1050_v31 = vmul.f32 -0.5, %v1577_v22  ;;  %v1043_v38 = vmul.f32 %v1575_v20, %v1042_v30  ;;  %v1053_v42 = vand.u32 2147483647, %v1577_v22 }
 0x38e   : > { %v980_v30 = vmul.f32 -0.5, %v1999_v33 }
 0x38f   : > { %1584 = vlog2.f32 %v1047_v23  ;;  %v1051_v39 = vadd.f32 1.0, %v1050_v31  ;;  %vm1054_vm1 = vcmp.lt.f32.partialorder %v1053_v42, 0.0004427343  ;;  %v991_v23 = vpop.permute.xlu0 %990 }
 0x390   : > { %v1579_v24 = vpop.eup %1578 }
 0x391   : > { %v1056_v28 = vadd.f32 1.0, %v1579_v24  ;;  %v1059_v40 = vmul.f32 -0.5, %v1579_v24  ;;  %v1052_v48 = vmul.f32 %v1577_v22, %v1051_v39  ;;  %v1062_v53 = vand.u32 2147483647, %v1579_v24 }
 0x392   : > { %v978_v22 = vmul.f32 -0.5, %v1991_v26 }
 0x393   : > { %1586 = vlog2.f32 %v1056_v28  ;;  %v1060_v49 = vadd.f32 1.0, %v1059_v40  ;;  %vm1063_vm2 = vcmp.lt.f32.partialorder %v1062_v53, 0.0004427343  ;;  %v995_v31 = vpop.permute.xlu0 %994 }
 0x394   : > { %v1581_v29 = vpop.eup %1580 }
 0x395   : > { %v1065_v32 = vadd.f32 1.0, %v1581_v29  ;;  %v1068_v50 = vmul.f32 -0.5, %v1581_v29  ;;  %v1061_v61 = vmul.f32 %v1579_v24, %v1060_v49  ;;  %v1071_v6 = vand.u32 2147483647, %v1581_v29 }
 0x396   : > { %v982_v24 = vmul.f32 %v978_v22, %v1991_v26 }
 0x397   : > { %1588 = vlog2.f32 %v1065_v32  ;;  %v1069_v62 = vadd.f32 1.0, %v1068_v50  ;;  %vm1072_vm3 = vcmp.lt.f32.partialorder %v1071_v6, 0.0004427343 }
 0x398   : > { %v1583_v36 = vpop.eup %1582  ;;  %v1002_v28 = vsub.f32 %v982_v24, %v991_v23  ;;  %1590 = vtanh.f32 %v2021_v60 }
 0x399   : > { %v1040_v37 = vmul.f32 0.6931472, %v1583_v36  ;;  %v1070_v12 = vmul.f32 %v1581_v29, %v1069_v62  ;;  %v983_v29 = vmul.f32 %v979_v25, %v1994_v27  ;;  %v984_v36 = vmul.f32 %v980_v30, %v1999_v33 }
 0x39a   : > { %v1350_v32 = vadd.f32 -0.9189385, %v1002_v28  ;;  %1592 = vtanh.f32 %v2024_v0 }
 0x39b   : > { %v1046_v43 = vsel %vm1045_vm0, %v1043_v38, %v1040_v37  ;;  %v1003_v35 = vsub.f32 %v983_v29, %v993_v15  ;;  %v981_v37 = vmul.f32 -0.5, %v2002_v34  ;;  %v997_v38 = vpop.permute.xlu1 %996  ;;  %v1004_v26 = vsub.f32 %v984_v36, %v995_v31 }
 0x39c   : > { %v1585_v44 = vpop.eup %1584  ;;  %v1074_v46 = vadd.f32 %v1046_v43, %v1018_v41  ;;  %1594 = vtanh.f32 %v2027_v7 }
 0x39d   : > { %v1049_v47 = vmul.f32 0.6931472, %v1585_v44  ;;  %v1351_v41 = vadd.f32 -0.9189385, %v1003_v35  ;;  %v985_v42 = vmul.f32 %v981_v37, %v2002_v34  ;;  %v1352_v44 = vadd.f32 -0.9189385, %v1004_v26 }
 0x39e   : > { %v1078_v52 = vsub.f32 %v1010_v45, %v1074_v46  ;;  %1596 = vtanh.f32 %v2033_v13 }
 0x39f   : > { %v1055_v54 = vsel %vm1054_vm1, %v1052_v48, %v1049_v47  ;;  %v1005_v45 = vsub.f32 %v985_v42, %v997_v38 }
 0x3a0   : > { %v1587_v55 = vpop.eup %1586  ;;  %v1082_v57 = vmul.f32 2.0, %v1078_v52  ;;  %v1075_v58 = vadd.f32 %v1055_v54, %v1019_v51 }
 0x3a1   : > { %v1058_v59 = vmul.f32 0.6931472, %v1587_v55  ;;  %v1353_v48 = vadd.f32 -0.9189385, %v1005_v45 }
 0x3a2   : > { %1090 = vrot.lane.b32.xlu0 %v1082_v57, %s1790_s23  ;;  %v1079_v2 = vsub.f32 %v1011_v56, %v1075_v58  ;;  %v1144_v57 = vand.u32 127, %v316_v1 }
 0x3a3   : > { %v1064_v5 = vsel %vm1063_vm2, %v1061_v61, %v1058_v59 }
 0x3a4   : > { %v1589_v3 = vpop.eup %1588  ;;  %v1083_v8 = vmul.f32 2.0, %v1079_v2  ;;  %v1076_v10 = vadd.f32 %v1064_v5, %v1020_v63  ;;  %vm1145_vm5 = vcmp.eq.s32.totalorder %v1144_v57, 8 }
 0x3a5   : > { %v1067_v11 = vmul.f32 0.6931472, %v1589_v3  ;;  %v1591_v58 = vpop.eup %1590 }
 0x3a6   : > { %1092 = vrot.lane.b32.xlu1 %v1083_v8, %s1790_s23  ;;  %v1080_v16 = vsub.f32 %v1012_v4, %v1076_v10  ;;  %v1139_v59 = vsel %vm1122_vm4, %v1591_v58, 0.0 }
 0x3a7   : > { %v1073_v17 = vsel %vm1072_vm3, %v1070_v12, %v1067_v11  ;;  %v1593_v62 = vpop.eup %1592 }
 0x3a8   : > { %v1084_v18 = vmul.f32 2.0, %v1080_v16  ;;  %v1077_v19 = vadd.f32 %v1073_v17, %v1021_v14  ;;  %v1140_v60 = vsel %vm1122_vm4, %v1593_v62, 0.0 }
 0x3a9   : > { %v1595_v7 = vpop.eup %1594 }
 0x3aa   : > { %1094 = vrot.lane.b32.xlu0 %v1084_v18, %s1790_s23  ;;  %v1081_v20 = vsub.f32 %v1013_v9, %v1077_v19  ;;  %v1141_v13 = vsel %vm1122_vm4, %v1595_v7, 0.0 }
 0x3ab   : > { %v1597_v6 = vpop.eup %1596 }
 0x3ac   : > { %v1085_v21 = vmul.f32 2.0, %v1081_v20  ;;  %v1142_v3 = vsel %vm1122_vm4, %v1597_v6, 0.0 }
 0x3ae   : > { %1096 = vrot.lane.b32.xlu1 %v1085_v21, %s1790_s23 }
 0x414   : > { %v1091_v39 = vpop.permute.xlu0 %1090 }
 0x415   : > { %v1102_v40 = vsub.f32 %v1350_v32, %v1091_v39 }
 0x417   : > { %1110 = vrot.lane.b32.xlu0 %v1102_v40, %s1791_s9 }
 0x418   : > { %v1093_v43 = vpop.permute.xlu1 %1092 }
 0x419   : > { %v1103_v27 = vsub.f32 %v1351_v41, %v1093_v43 }
 0x41b   : > { %1112 = vrot.lane.b32.xlu1 %v1103_v27, %s1791_s9 }
 0x41c   : > { %v1095_v46 = vpop.permute.xlu0 %1094 }
 0x41d   : > { %v1104_v47 = vsub.f32 %v1352_v44, %v1095_v46 }
 0x41f   : > { %1114 = vrot.lane.b32.xlu0 %v1104_v47, %s1791_s9 }
 0x420   : > { %v1097_v33 = vpop.permute.xlu1 %1096 }
 0x421   : > { %v1105_v49 = vsub.f32 %v1353_v48, %v1097_v33 }
 0x423   : > { %1116 = vrot.lane.b32.xlu1 %v1105_v49, %s1791_s9 }
 0x489   : > { %v1111_v50 = vpop.permute.xlu0 %1110 }
 0x48a   : > { %v1123_v51 = vsel %vm1122_vm4, %v1111_v50, 0.0 }
 0x48b   : > { %1124 = vadd.xlane.f32.xlu0 %v1123_v51 }
 0x48d   : > { %v1113_v34 = vpop.permute.xlu1 %1112 }
 0x48e   : > { %v1126_v52 = vsel %vm1122_vm4, %v1113_v34, 0.0 }
 0x48f   : > { %1127 = vadd.xlane.f32.xlu1 %v1126_v52 }
 0x491   : > { %v1115_v53 = vpop.permute.xlu0 %1114 }
 0x492   : > { %v1129_v54 = vsel %vm1122_vm4, %v1115_v53, 0.0 }
 0x493   : > { %1130 = vadd.xlane.f32.xlu0 %v1129_v54 }
 0x495   : > { %v1117_v55 = vpop.permute.xlu1 %1116 }
 0x496   : > { %v1132_v56 = vsel %vm1122_vm4, %v1117_v55, 0.0 }
 0x497   : > { %1133 = vadd.xlane.f32.xlu0 %v1132_v56 }
 0x514   : > { %v1125_v61 = vpop.xlane.xlu0 %1124 }
 0x515   : > { %v1146_v63 = vsel %vm1145_vm5, %v1125_v61, %v1139_v59 }
 0x516   : > { %1150 = vst [vmem:[%s286_s7] sm:$0xff] %v1146_v63 }
 0x518   : > { %v1128_v0 = vpop.xlane.xlu1 %1127 }
 0x519   : > { %v1147_v1 = vsel %vm1145_vm5, %v1128_v0, %v1140_v60 }
 0x51a   : > { %1151 = vst [vmem:[%s286_s7 + $0x8] sm:$0xff] %v1147_v1 }
 0x51c   : > { %v1131_v2 = vpop.xlane.xlu0 %1130 }
 0x51d   : > { %v1148_v5 = vsel %vm1145_vm5, %v1131_v2, %v1141_v13 }
 0x51e   : > { %1152 = vst [vmem:[%s286_s7 + $0x10] sm:$0xff] %v1148_v5 }
 0x520   : > { %v1134_v4 = vpop.xlane.xlu0 %1133 }
 0x521   : > { %v1149_v8 = vsel %vm1145_vm5, %v1134_v4, %v1142_v3 }
 0x522   : > { %1153 = vst [vmem:[%s286_s7 + $0x18] sm:$0xff] %v1149_v8 }
 0x523   : > { %1717 = shalt.err (!%p1714_p10)
}
 0x524   : > { %s1718_s15 = scalar_lea.hbm %s2076_s26, 512  ;;  %s1722_s23 = scalar_lea.hbm %s2126_s5, 1024 }
 0x525   : > { %p1719_p6 = scmp.ne.s32.totalorder %s2076_s26, %s1718_s15  ;;  %p1723_p3 = scmp.lt.s32.totalorder %s2076_s26, %s2126_s5 }
 0x526   : > { %p1724_p11 = scmp.lt.s32.totalorder %s1722_s23, %s1718_s15 }
 0x527   : > { %p1720_p4 = pnand %p1719_p6, %p2145_p1 }
 0x528   : > { %p1725_p5 = por %p1724_p11, %p1723_p3 }
 0x529   : > { %p1721_p8 = pneg %p1720_p4 }
 0x52b   : > { %p1726_p7 = pnand %p1725_p5, %p1721_p8 }
 0x52d   : > { %1729 = shalt.err (!%p1726_p7)
}
 0x52e   : > { %s1793_s28 = smov 128   ;;  %s1794_s10 = smov 8  }
 0x52f   : > { %1403 = dma.vmem_to_hbm [thread:$0]  (%p2145_p1), %s2071_s8, 512, %s2076_s26, %s1155_s22, %s1793_s28, %s1793_s28, %s1794_s10  }
 0x530 PF: > { %s1183_s24 = sand.u32 1, %s1764_s18   ;;  %p2146_p12 = scmp.ne.s32.totalorder %s2133_s25, 0 }
 0x531   : > { %p2147_p9 = scmp.ge.s32.totalorder %s1776_s21, 2  ;;  %s1184_s11 = scalar_lea.sflag [#allocation4], %s1183_s24 }
 0x533   : > { %p1420_p13 = pnand %p2147_p9, %p2146_p12 }
 0x535   : > { %p1421_p0 = pneg %p1420_p13 }
 0x537   : > { %1759 = dma.done.wait (%p1421_p0), %s1184_s11, 512  }
 0x538   : > { %1761 = vsyncadd (%p1421_p0), %s1184_s11, 4294966784  ;;  %p20_p2 = scmp.ge.s32.totalorder %s1911_s6, 4   ;;  %s2148_s18 = smov %s1768_s19 }
 0x539   : > { %s2149_s19 = smov %s1772_s20  ;;  %s2150_s20 = smov %s1921_s12 }
 0x53a   : > { %s2151_s21 = smov %s1911_s6  ;;  %22 = sbr.rel (!%p20_p2) target bundleno = 7 (0x7), region = 97 }
 0x53f   :  { %1189 = vsyncpa [#allocation3], 1 }
 0x540   :  { %1191 = vsyncpa [#allocation3 + $0x1], 1 }
 0x541   :  { %1192 = vsyncpa [#allocation6], 1 }
 0x542   :  { %1193 = vsyncpa [#allocation9], 1 }
 0x543   :  { %1194 = vsyncpa [#allocation4], 1 }
 0x544   :  { %1196 = vsyncpa [#allocation4 + $0x1], 1 }

</bundles_post_ra>
